<compile_context>
chip_gen: v7x
topology: tpu7x:2x2x1
jax: 0.10.0
libtpu: 0.0.40
codegen_flags: <defaults>
</compile_context>

<pallas_src>
import functools

import jax
import jax.numpy as jnp
from jax.experimental import pallas as pl
from jax.experimental.pallas import tpu as pltpu

EPS = 1e-8
_BIG = 1e30                      # value-mask sentinel (safe while hinge math is f32)


def _round_up(v, m):
    return (v + m - 1) // m * m


def _clamp_vmem(nbytes):
    return int(min(max(nbytes, 32 << 20), 96 << 20))


# ---------------------------------------------------------------------------
# Kernel 1: tiled pairwise euclidean distance matrix (MXU, f32 accumulation)
# ---------------------------------------------------------------------------
def _dist_kernel(a_ref, b_ref, sq_i_ref, sq_j_ref, out_ref):
    kk = pl.program_id(2)

    @pl.when(kk == 0)
    def _init():
        out_ref[...] = jnp.zeros_like(out_ref)

    # (TM, TK) x (TN, TK)^T on the MXU, native input dtype, f32 accumulation.
    out_ref[...] += jax.lax.dot_general(
        a_ref[...], b_ref[...],
        dimension_numbers=(((1,), (1,)), ((), ())),
        preferred_element_type=jnp.float32,
    )

    @pl.when(kk == pl.num_programs(2) - 1)
    def _finalize():
        dot = out_ref[...]                                      # (TM, TN)
        d2 = sq_i_ref[...] + sq_j_ref[...] - 2.0 * dot          # ||xi||^2 + ||xj||^2 - 2<xi,xj>
        d2 = jnp.maximum(d2, 0.0)                               # F.relu
        out_ref[...] = jnp.where(d2 > 0.0, jnp.sqrt(d2), 0.0)   # sqrt with exact-0 fixup


# ---------------------------------------------------------------------------
# Kernel 2: batch-all triplet reduction (no (B,B,B) tensor, no negative grid axis)
# ---------------------------------------------------------------------------
def _triplet_kernel(lab_sref, d_ref, lab_row_ref, lab_col_ref, sum_ref, cnt_ref,
                    *, margin, b_real, kh, bi, jg):
    g = pl.program_id(0)          # positive group (splits the j loop; v7x dual-TC)
    i = pl.program_id(1)          # anchor block (anchors on lanes)

    lab_i = lab_row_ref[...]                                           # (1, BI)
    i_idx = jax.lax.broadcasted_iota(jnp.int32, (1, bi), 1) + i * bi   # (1, BI)
    i_valid = i_idx < b_real

    lab_k = lab_col_ref[...]                                           # (KH, 1)
    k_idx = jax.lax.broadcasted_iota(jnp.int32, (kh, 1), 0)            # (KH, 1)
    k_valid = k_idx < b_real

    # d(anchor, negative) with invalid negatives pushed to +BIG.  Computed
    # ONCE per anchor block and reused by every positive j.
    neg_ok = (lab_k != lab_i) & k_valid                                # (KH, BI)
    an_m = jnp.where(neg_ok, d_ref[...], _BIG)                         # (KH, BI) f32

    nb8 = kh // 8
    j_lo = g * jg

    def body(jj, carry):
        psum, pcnt = carry                                             # (8, BI) each
        j = j_lo + jj
        j_ok = j < b_real
        j_c = jnp.minimum(j, b_real - 1)                               # safe index
        lab_j = lab_sref[j_c]                                          # scalar (SMEM)
        ap = d_ref[pl.ds(j_c, 1), :]                                   # (1, BI) d(anchor, pos)
        pos_ok = (lab_i == lab_j) & (i_idx != j_c) & i_valid & j_ok    # (1, BI)
        apm = jnp.where(pos_ok, ap + margin, -_BIG)                    # (1, BI)
        raw = apm - an_m                                               # (KH, BI)
        hinge = jnp.maximum(raw, 0.0)                                  # masked terms -> 0
        # Fold to (8, BI) partials with pure VALU adds (no cross-sublane reduce
        # inside the loop); final reduction is done in the wrapper.
        psum = psum + jnp.sum(hinge.reshape(nb8, 8, bi), axis=0)
        pcnt = pcnt + jnp.sum((raw > EPS).astype(jnp.float32).reshape(nb8, 8, bi),
                              axis=0)
        return psum, pcnt

    zero = jnp.zeros((8, bi), jnp.float32)
    psum, pcnt = jax.lax.fori_loop(0, jg, body, (zero, zero))

    sum_ref[...] = psum[None]
    cnt_ref[...] = pcnt[None]


# ---------------------------------------------------------------------------
# Wrapper
# ---------------------------------------------------------------------------
def batch_all_triplet_loss(embeddings, labels, margin=1.0):
    """embeddings: (B, D), labels: (B,) int  ->  scalar float32 loss."""
    B, D = embeddings.shape
    BI = 128

    B_pad = _round_up(B, 256)
    D_pad = _round_up(D, 128)

    # Largest K tile (multiple of 128) that divides D_pad, capped at 2048.
    TK = 128
    for cand in range(128, min(D_pad, 2048) + 1, 128):
        if D_pad % cand == 0:
            TK = cand
    TM = 512 if B_pad % 512 == 0 else 256
    TN = TM

    # Keep the native dtype (bf16 inputs feed the MXU directly); zero-pad.
    x_pad = jnp.pad(embeddings, ((0, B_pad - B), (0, D_pad - D)))
    lab_pad = jnp.pad(labels.astype(jnp.int32), (0, B_pad - B))

    # Squared norms in f32 (tiny O(B*D) prep, replaces eye-masked reductions).
    sq = jnp.sum(embeddings.astype(jnp.float32) ** 2, axis=-1)
    sq_pad = jnp.pad(sq, (0, B_pad - B))
    sq_col = sq_pad.reshape(B_pad, 1)
    sq_row = sq_pad.reshape(1, B_pad)

    itemsize = x_pad.dtype.itemsize
    vmem1 = _clamp_vmem(2 * (TM + TN) * TK * itemsize + 2 * TM * TN * 4 + (4 << 20))

    # ---- kernel 1: (B_pad, B_pad) euclidean distance matrix ----------------
    dist = pl.pallas_call(
        _dist_kernel,
        out_shape=jax.ShapeDtypeStruct((B_pad, B_pad), jnp.float32),
        grid=(B_pad // TM, B_pad // TN, D_pad // TK),
        in_specs=[
            pl.BlockSpec((TM, TK), lambda i, j, kk: (i, kk)),   # x (row block)
            pl.BlockSpec((TN, TK), lambda i, j, kk: (j, kk)),   # x (col block)
            pl.BlockSpec((TM, 1), lambda i, j, kk: (i, 0)),     # ||x_i||^2
            pl.BlockSpec((1, TN), lambda i, j, kk: (0, j)),     # ||x_j||^2
        ],
        out_specs=pl.BlockSpec((TM, TN), lambda i, j, kk: (i, j)),
        compiler_params=pltpu.CompilerParams(
            dimension_semantics=("parallel", "parallel", "arbitrary"),
            vmem_limit_bytes=vmem1),
    )(x_pad, x_pad, sq_col, sq_row)

    # ---- kernel 2: batch-all triplet reduction ------------------------------
    KH = _round_up(B, 8)              # negative-slab height (only real rows)
    NI = -(-B // BI)                  # anchor blocks that contain real rows
    NJG = 2 if NI % 2 == 1 else 1     # split positives so parallel work count is even
    JG = -(-B // NJG)                 # positives per group (ceil)
    NG = NJG * NI

    lab_row = lab_pad.reshape(1, B_pad)
    lab_col = lab_pad[:KH].reshape(KH, 1)

    # dist slab (double-buffered) + lane-padded label column + elementwise temps.
    vmem2 = _clamp_vmem(int(8.5 * KH * BI * 4) + 2 * KH * 512 + (4 << 20))

    kernel2 = functools.partial(_triplet_kernel, margin=float(margin),
                                b_real=B, kh=KH, bi=BI, jg=JG)

    sums, cnts = pl.pallas_call(
        kernel2,
        out_shape=(jax.ShapeDtypeStruct((NG, 8, BI), jnp.float32),
                   jax.ShapeDtypeStruct((NG, 8, BI), jnp.float32)),
        grid_spec=pltpu.PrefetchScalarGridSpec(
            num_scalar_prefetch=1,                      # labels -> SMEM
            grid=(NJG, NI),
            in_specs=[
                # dist[:KH, anchor block]: d(anchor, k) for every real k,
                # resident for the whole j loop of this anchor block.
                pl.BlockSpec((KH, BI), lambda g, i, lab: (0, i)),
                # anchor labels as a lane row.
                pl.BlockSpec((1, BI), lambda g, i, lab: (0, i)),
                # negative labels as a sublane column.
                pl.BlockSpec((KH, 1), lambda g, i, lab: (0, 0)),
            ],
            out_specs=[
                pl.BlockSpec((1, 8, BI), lambda g, i, lab: (g * NI + i, 0, 0)),
                pl.BlockSpec((1, 8, BI), lambda g, i, lab: (g * NI + i, 0, 0)),
            ],
        ),
        compiler_params=pltpu.CompilerParams(
            dimension_semantics=("parallel", "parallel"),
            vmem_limit_bytes=vmem2),
    )(lab_pad, dist, lab_row, lab_col)

    total = jnp.sum(sums)
    num_positive = jnp.sum(cnts)
    return total / (num_positive + EPS)


# ---------------------------------------------------------------------------
# Pure-JAX reference mirroring the PyTorch module (for verification)
# ---------------------------------------------------------------------------
def _reference_loss(embeddings, labels, margin=1.0):
    x = embeddings.astype(jnp.float32)
    dot = x @ x.T
    sq = jnp.diag(dot)
    d2 = sq[None, :] - 2.0 * dot + sq[:, None]
    d2 = jnp.maximum(d2, 0.0)
    zmask = (d2 == 0.0).astype(jnp.float32)
    dist = jnp.sqrt(d2 + zmask * EPS) * (1.0 - zmask)

    tl = dist[:, :, None] - dist[:, None, :] + margin
    B = labels.shape[0]
    eye = jnp.eye(B, dtype=bool)
    not_eye = ~eye
    distinct = not_eye[:, :, None] & not_eye[:, None, :] & not_eye[None, :, :]
    leq = labels[:, None] == labels[None, :]
    valid = leq[:, :, None] & (~leq)[:, None, :]
    mask = (distinct & valid).astype(jnp.float32)
    tl = jnp.maximum(tl * mask, 0.0)
    npos = jnp.sum((tl > EPS).astype(jnp.float32))
    return jnp.sum(tl) / (npos + EPS)


if __name__ == "__main__":
    key = jax.random.PRNGKey(0)
    k1, k2, k3, k4, k5, k6 = jax.random.split(key, 6)

    # Case 1: small, (batch, embedding_dim) layout of the module; NI=1 path
    # (positive loop split across two parallel grid groups).
    emb1 = jax.random.normal(k1, (8, 32), dtype=jnp.float32)
    lab1 = jax.random.randint(k2, (8,), 0, 3, dtype=jnp.int32)
    out1 = jax.block_until_ready(batch_all_triplet_loss(emb1, lab1, margin=1.0))
    ref1 = _reference_loss(emb1, lab1, margin=1.0)
    assert jnp.allclose(out1, ref1, rtol=2e-3, atol=1e-4), (out1, ref1)

    # Case 2: B, D not multiples of (8, 128) -> exercises padding / validity masks.
    emb2 = jax.random.normal(k3, (20, 48), dtype=jnp.float32)
    lab2 = jax.random.randint(k4, (20,), 0, 4, dtype=jnp.int32)
    out2 = jax.block_until_ready(batch_all_triplet_loss(emb2, lab2, margin=1.0))
    ref2 = _reference_loss(emb2, lab2, margin=1.0)
    assert jnp.allclose(out2, ref2, rtol=2e-3, atol=1e-4), (out2, ref2)

    # Case 3: two anchor blocks (multi-step grid, even-block path).
    emb3 = jax.random.normal(k5, (200, 96), dtype=jnp.float32)
    lab3 = jax.random.randint(k6, (200,), 0, 5, dtype=jnp.int32)
    out3 = jax.block_until_ready(batch_all_triplet_loss(emb3, lab3, margin=1.0))
    ref3 = _reference_loss(emb3, lab3, margin=1.0)
    assert jnp.allclose(out3, ref3, rtol=2e-3, atol=1e-4), (out3, ref3)

    print("KERNEL_OK")
</pallas_src>

<mosaic_0001>
module attributes {stable_mosaic.version = 11 : i64} {
  func.func @_dist_kernel(%arg0: i32, %arg1: i32, %arg2: i32, %arg3: memref<256x128xf32, #tpu.memory_space<vmem>>, %arg4: memref<256x128xf32, #tpu.memory_space<vmem>>, %arg5: memref<256x1xf32, #tpu.memory_space<vmem>>, %arg6: memref<1x256xf32, #tpu.memory_space<vmem>>, %arg7: memref<256x256xf32, #tpu.memory_space<vmem>>) attributes {dimension_semantics = [#tpu.dimension_semantics<parallel>, #tpu.dimension_semantics<parallel>, #tpu.dimension_semantics<arbitrary>], iteration_bounds = array<i64: 1, 1, 1>, scalar_prefetch = 0 : i64, scratch_operands = 0 : i64, tpu.core_type = #tpu.core_type<tc>, window_params = [{transform_indices = @transform_0, window_bounds = array<i64: 256, 128>}, {transform_indices = @transform_1, window_bounds = array<i64: 256, 128>}, {transform_indices = @transform_2, window_bounds = array<i64: 256, 1>}, {transform_indices = @transform_3, window_bounds = array<i64: 1, 256>}, {transform_indices = @transform_4, window_bounds = array<i64: 256, 256>}]} {
    %c0_i32 = arith.constant 0 : i32
    %0 = arith.cmpi eq, %arg2, %c0_i32 : i32
    %1 = arith.extui %0 : i1 to i32
    %c0_i32_0 = arith.constant 0 : i32
    %2 = arith.cmpi ne, %1, %c0_i32_0 : i32
    scf.if %2 {
      %cst_10 = arith.constant 0.000000e+00 : f32
      %12 = vector.broadcast %cst_10 : f32 to vector<256x256xf32>
      %c0_11 = arith.constant 0 : index
      %c0_12 = arith.constant 0 : index
      %13 = vector.load %arg7[%c0_11, %c0_12] : memref<256x256xf32, #tpu.memory_space<vmem>>, vector<256x256xf32>
      tpu.vector_store %arg7[%c0_11, %c0_12], %12 {strides = array<i32>} : memref<256x256xf32, #tpu.memory_space<vmem>>, vector<256x256xf32>,
    } else {
    }
    %c0 = arith.constant 0 : index
    %c0_1 = arith.constant 0 : index
    %3 = vector.load %arg7[%c0, %c0_1] : memref<256x256xf32, #tpu.memory_space<vmem>>, vector<256x256xf32>
    %c0_2 = arith.constant 0 : index
    %c0_3 = arith.constant 0 : index
    %4 = vector.load %arg3[%c0_2, %c0_3] : memref<256x128xf32, #tpu.memory_space<vmem>>, vector<256x128xf32>
    %c0_4 = arith.constant 0 : index
    %c0_5 = arith.constant 0 : index
    %5 = vector.load %arg4[%c0_4, %c0_5] : memref<256x128xf32, #tpu.memory_space<vmem>>, vector<256x128xf32>
    %cst = arith.constant dense<0.000000e+00> : vector<256x256xf32>
    %6 = tpu.matmul %4, %5, %cst {dimension_numbers = #tpu.dot_dimension_numbers<[1], [1], [0], [0], [0, 0, 1, 0], [], []>} : vector<256x128xf32>, vector<256x128xf32>, vector<256x256xf32> -> vector<256x256xf32>
    %7 = arith.addf %3, %6 : vector<256x256xf32>
    %c0_6 = arith.constant 0 : index
    %c0_7 = arith.constant 0 : index
    %8 = vector.load %arg7[%c0_6, %c0_7] : memref<256x256xf32, #tpu.memory_space<vmem>>, vector<256x256xf32>
    tpu.vector_store %arg7[%c0_6, %c0_7], %7 {strides = array<i32>} : memref<256x256xf32, #tpu.memory_space<vmem>>, vector<256x256xf32>,
    %c0_i32_8 = arith.constant 0 : i32
    %9 = arith.cmpi eq, %arg2, %c0_i32_8 : i32
    %10 = arith.extui %9 : i1 to i32
    %c0_i32_9 = arith.constant 0 : i32
    %11 = arith.cmpi ne, %10, %c0_i32_9 : i32
    scf.if %11 {
      %c0_10 = arith.constant 0 : index
      %c0_11 = arith.constant 0 : index
      %12 = vector.load %arg7[%c0_10, %c0_11] : memref<256x256xf32, #tpu.memory_space<vmem>>, vector<256x256xf32>
      %c0_12 = arith.constant 0 : index
      %c0_13 = arith.constant 0 : index
      %13 = vector.load %arg5[%c0_12, %c0_13] : memref<256x1xf32, #tpu.memory_space<vmem>>, vector<256x1xf32>
      %c0_14 = arith.constant 0 : index
      %c0_15 = arith.constant 0 : index
      %14 = vector.load %arg6[%c0_14, %c0_15] : memref<1x256xf32, #tpu.memory_space<vmem>>, vector<1x256xf32>
      %15 = vector.broadcast %13 : vector<256x1xf32> to vector<256x256xf32>
      %16 = vector.broadcast %14 : vector<1x256xf32> to vector<256x256xf32>
      %17 = arith.addf %15, %16 : vector<256x256xf32>
      %cst_16 = arith.constant 2.000000e+00 : f32
      %18 = vector.broadcast %cst_16 : f32 to vector<256x256xf32>
      %19 = arith.mulf %18, %12 : vector<256x256xf32>
      %20 = arith.subf %17, %19 : vector<256x256xf32>
      %cst_17 = arith.constant 0.000000e+00 : f32
      %21 = vector.broadcast %cst_17 : f32 to vector<256x256xf32>
      %22 = arith.maximumf %20, %21 : vector<256x256xf32>
      %cst_18 = arith.constant 0.000000e+00 : f32
      %23 = vector.broadcast %cst_18 : f32 to vector<256x256xf32>
      %24 = arith.cmpf ogt, %22, %23 : vector<256x256xf32>
      %25 = math.sqrt %22 : vector<256x256xf32>
      %cst_19 = arith.constant 0.000000e+00 : f32
      %26 = vector.broadcast %cst_19 : f32 to vector<256x256xf32>
      %27 = arith.select %24, %25, %26 : vector<256x256xi1>, vector<256x256xf32>
      %c0_20 = arith.constant 0 : index
      %c0_21 = arith.constant 0 : index
      %28 = vector.load %arg7[%c0_20, %c0_21] : memref<256x256xf32, #tpu.memory_space<vmem>>, vector<256x256xf32>
      tpu.vector_store %arg7[%c0_20, %c0_21], %27 {strides = array<i32>} : memref<256x256xf32, #tpu.memory_space<vmem>>, vector<256x256xf32>,
    } else {
    }
    return
  }
  func.func @transform_0(%arg0: i32, %arg1: i32, %arg2: i32) -> (i32, i32) {
    %c0_i32 = arith.constant 0 : i32
    return %arg0, %arg2 : i32, i32
  }
  func.func @transform_1(%arg0: i32, %arg1: i32, %arg2: i32) -> (i32, i32) {
    %c0_i32 = arith.constant 0 : i32
    return %arg1, %arg2 : i32, i32
  }
  func.func @transform_2(%arg0: i32, %arg1: i32, %arg2: i32) -> (i32, i32) {
    %c0_i32 = arith.constant 0 : i32
    %c0_i32_0 = arith.constant 0 : i32
    return %arg0, %c0_i32 : i32, i32
  }
  func.func @transform_3(%arg0: i32, %arg1: i32, %arg2: i32) -> (i32, i32) {
    %c0_i32 = arith.constant 0 : i32
    %c0_i32_0 = arith.constant 0 : i32
    return %c0_i32, %arg1 : i32, i32
  }
  func.func @transform_4(%arg0: i32, %arg1: i32, %arg2: i32) -> (i32, i32) {
    %c0_i32 = arith.constant 0 : i32
    return %arg0, %arg1 : i32, i32
  }
}

</mosaic_0001>

<bundles_post_ra>
// kernel: tpu_custom_call.1
= control target key start
LH: loop header
LB: loop body
LE: loop exit
PB: predicated region body
PF: predicated region fallthrough
CT: control target
= control target key end

     0   :  { %9 = vsyncpa [#allocation3], 0  ;;  %s3613_s0 = inlined_call_operand.vmem [shape: f32[256,128], index: 0, kind: input, shape index: {}]   ;;  %s3614_s1 = inlined_call_operand.hbm [shape: f32[256,128], index: 1, kind: input, shape index: {}]   ;;  %s3615_s2 = inlined_call_operand.vmem [shape: f32[256,1], index: 2, kind: input, shape index: {}]   ;;  %s3616_s3 = inlined_call_operand.vmem [shape: f32[1,256], index: 3, kind: input, shape index: {}]   ;;  %s3617_s4 = inlined_call_operand.hbm [shape: f32[256,256], index: 4, kind: output, shape index: {}]  }
   0x1   :  { %10 = vsyncpa [#allocation4], 0  ;;  %s2127_s15 = smov [#allocation2]   ;;  %s2079_s19 = scalar_lea.hbm %s3614_s1, 4096 }
   0x2   :  { %s18_s16 = sshll.u32 %s2127_s15, 4  ;;  %p2080_p0 = scmp.ne.s32.totalorder %s3614_s1, %s2079_s19  ;;  %s19_s16 = int_to_ptr.vmem [resolvable:$true] %s18_s16 }
   0x3   :  { %p2083_p1 = scmp.lt.u32.totalorder %s2079_s19, %s3614_s1 }
   0x5   :  { %p2085_p2 = pnand %p2083_p1, %p2080_p0 }
   0x7   :  { %2088 = shalt.err (!%p2085_p2)
}
   0x8   :  { %s2089_s24 = scalar_lea.vmem %s19_s16, 4096  ;;  %p2094_p4 = scmp.lt.s32.totalorder %s19_s16, %s19_s16 }
   0x9   :  { %p2090_p3 = scmp.ne.s32.totalorder %s19_s16, %s2089_s24  ;;  %p2095_p5 = scmp.lt.s32.totalorder %s2089_s24, %s2089_s24 }
   0xb   :  { %p2096_p6 = por %p2095_p5, %p2094_p4 }
   0xd   :  { %p2097_p7 = pnand %p2096_p6, %p2090_p3 }
   0xf   :  { %2100 = shalt.err (!%p2097_p7)
}
  0x10   :  { %s2128_s25 = smov 128   ;;  %s2129_s26 = smov 8  }
  0x11   :  { %24 = dma.hbm_to_vmem [thread:$0]  %s3614_s1, 4096, %s19_s16, [#allocation3], %s2128_s25, %s2128_s25, %s2129_s26  }
  0x12   :  { %2123 = dma.done.wait [#allocation3], 4096  }
  0x13   :  { %2124 = vsyncadd [#allocation3], 4294963200  ;;  %v2130_v0 = vmov 0   ;;  %v212_v1 = vld [vmem:[#allocation2 + $0x80] sm:$0xff]  ;;  %v213_v2 = vld [vmem:[#allocation2 + $0x88] sm:$0xff] }
  0x14   :  { %1950 = vset.pattern.permute.xlu1 %v2130_v0  ;;  %1949 = vset.pattern.permute.xlu0 %v2130_v0  ;;  %v196_v3 = vld [vmem:[#allocation2] sm:$0xff]  ;;  %v1893_v4 = vpack.c.bf16 %v213_v2, %v212_v1  ;;  %v197_v5 = vld [vmem:[#allocation2 + $0x8] sm:$0xff]  ;;  %v214_v6 = vld [vmem:[#allocation2 + $0x90] sm:$0xff] }
  0x15   :  { %v215_v7 = vld [vmem:[#allocation2 + $0x98] sm:$0xff]  ;;  %v1895_v8 = vpack.c.bf16 %v197_v5, %v196_v3  ;;  %v198_v10 = vld [vmem:[#allocation2 + $0x10] sm:$0xff]  ;;  %v216_v12 = vld [vmem:[#allocation2 + $0xa0] sm:$0xff] }
  0x16   :  { %v1897_v9 = vpack.c.bf16 %v215_v7, %v214_v6  ;;  %1894 = vmatprep.subr.bf16.mxu0 %v1893_v4  ;;  %1925 = vmatprep.subr.bf16.mxu1 %v1893_v4  ;;  %v199_v11 = vld [vmem:[#allocation2 + $0x18] sm:$0xff]  ;;  %v217_v13 = vld [vmem:[#allocation2 + $0xa8] sm:$0xff]  ;;  %v2174_v16 = vld [vmem:[%s3613_s0] sm:$0xff] }
  0x17   :  { %1896 = vmatpush3.bf16.xpose.msra.mxu0 %v1895_v8  ;;  %1933 = vmatpush3.bf16.xpose.msra.mxu1 %v1895_v8  ;;  %v1899_v14 = vpack.c.bf16 %v199_v11, %v198_v10  ;;  %v1901_v15 = vpack.c.bf16 %v217_v13, %v216_v12  ;;  %v2180_v17 = vld [vmem:[%s3613_s0 + $0x80] sm:$0xff]  ;;  %v201_v19 = vld [vmem:[#allocation2 + $0x28] sm:$0xff]  ;;  %v218_v20 = vld [vmem:[#allocation2 + $0xb0] sm:$0xff] }
  0x18   :  { %1898 = vmatprep.subr.bf16.mxu0 %v1897_v9  ;;  %1926 = vmatprep.subr.bf16.mxu1 %v1897_v9  ;;  %v200_v18 = vld [vmem:[#allocation2 + $0x20] sm:$0xff]  ;;  %v219_v21 = vld [vmem:[#allocation2 + $0xb8] sm:$0xff]  ;;  %v682_v23 = vld [vmem:[%s3615_s2 + $0x10] sm:$0xff] }
  0x19   :  { %1829 = vmatprep.mubr.f32.mxu0 %v2174_v16  ;;  %1861 = vmatprep.mubr.f32.mxu1 %v2180_v17  ;;  %v1903_v22 = vpack.c.bf16 %v201_v19, %v200_v18  ;;  %v1905_v24 = vpack.c.bf16 %v219_v21, %v218_v20  ;;  %v680_v25 = vld [vmem:[%s3615_s2] sm:$0xff]  ;;  %v683_v26 = vld [vmem:[%s3615_s2 + $0x18] sm:$0xff]  ;;  %v681_v27 = vld [vmem:[%s3615_s2 + $0x8] sm:$0xff] }
  0x1a   :  { %725 = vperm.xlu1 %1950, %v682_v23   ;;  %715 = vperm.xlu0 %1949, %v680_v25   ;;  %v202_v28 = vld [vmem:[#allocation2 + $0x30] sm:$0xff]  ;;  %v203_v29 = vld [vmem:[#allocation2 + $0x38] sm:$0xff]  ;;  %v220_v30 = vld [vmem:[#allocation2 + $0xc0] sm:$0xff] }
  0x1b   :  { %v221_v31 = vld [vmem:[#allocation2 + $0xc8] sm:$0xff]  ;;  %v684_v33 = vld [vmem:[%s3615_s2 + $0x20] sm:$0xff]  ;;  %v1907_v34 = vpack.c.bf16 %v203_v29, %v202_v28  ;;  %v687_v36 = vld [vmem:[%s3615_s2 + $0x38] sm:$0xff] }
  0x1c   :  { %v685_v32 = vld [vmem:[%s3615_s2 + $0x28] sm:$0xff]  ;;  %v1909_v35 = vpack.c.bf16 %v221_v31, %v220_v30  ;;  %v686_v37 = vld [vmem:[%s3615_s2 + $0x30] sm:$0xff]  ;;  %v204_v38 = vld [vmem:[#allocation2 + $0x40] sm:$0xff] }
  0x1d   :  { %v205_v39 = vld [vmem:[#allocation2 + $0x48] sm:$0xff]  ;;  %v222_v40 = vld [vmem:[#allocation2 + $0xd0] sm:$0xff]  ;;  %v223_v41 = vld [vmem:[#allocation2 + $0xd8] sm:$0xff] }
  0x1e   :  { %730 = vperm.xlu1 %1950, %v683_v26   ;;  %720 = vperm.xlu0 %1949, %v681_v27   ;;  %v689_v42 = vld [vmem:[%s3615_s2 + $0x48] sm:$0xff]  ;;  %v688_v43 = vld [vmem:[%s3615_s2 + $0x40] sm:$0xff]  ;;  %v1911_v44 = vpack.c.bf16 %v205_v39, %v204_v38  ;;  %v1913_v45 = vpack.c.bf16 %v223_v41, %v222_v40  ;;  %v691_v46 = vld [vmem:[%s3615_s2 + $0x58] sm:$0xff] }
  0x1f   :  { %1900 = vmatpush3.bf16.xpose.msra.mxu0 %v1899_v14  ;;  %1934 = vmatpush3.bf16.xpose.msra.mxu1 %v1899_v14  ;;  %v690_v47 = vld [vmem:[%s3615_s2 + $0x50] sm:$0xff]  ;;  %v207_v49 = vld [vmem:[#allocation2 + $0x58] sm:$0xff]  ;;  %v224_v50 = vld [vmem:[#allocation2 + $0xe0] sm:$0xff] }
  0x20   :  { %1902 = vmatprep.subr.bf16.mxu0 %v1901_v15  ;;  %1927 = vmatprep.subr.bf16.mxu1 %v1901_v15  ;;  %v206_v48 = vld [vmem:[#allocation2 + $0x50] sm:$0xff]  ;;  %v225_v51 = vld [vmem:[#allocation2 + $0xe8] sm:$0xff]  ;;  %v692_v53 = vld [vmem:[%s3615_s2 + $0x60] sm:$0xff] }
  0x21   :  { %v693_v52 = vld [vmem:[%s3615_s2 + $0x68] sm:$0xff]  ;;  %v1915_v54 = vpack.c.bf16 %v207_v49, %v206_v48  ;;  %v1917_v55 = vpack.c.bf16 %v225_v51, %v224_v50  ;;  %v695_v56 = vld [vmem:[%s3615_s2 + $0x78] sm:$0xff]  ;;  %v694_v57 = vld [vmem:[%s3615_s2 + $0x70] sm:$0xff]  ;;  %v874_v49 = vlaneseq }
  0x22   :  { %740 = vperm.xlu1 %1950, %v685_v32   ;;  %735 = vperm.xlu0 %1949, %v684_v33   ;;  %v208_v58 = vld [vmem:[#allocation2 + $0x60] sm:$0xff]  ;;  %v209_v59 = vld [vmem:[#allocation2 + $0x68] sm:$0xff]  ;;  %v226_v60 = vld [vmem:[#allocation2 + $0xf0] sm:$0xff] }
  0x23   :  { %v227_v61 = vld [vmem:[#allocation2 + $0xf8] sm:$0xff]  ;;  %v697_v62 = vld [vmem:[%s3615_s2 + $0x88] sm:$0xff]  ;;  %v696_v63 = vld [vmem:[%s3615_s2 + $0x80] sm:$0xff]  ;;  %v1919_v0 = vpack.c.bf16 %v209_v59, %v208_v58  ;;  %v875_v50 = vshrl.u32 %v874_v49, 7 }
  0x24   :  { %v1921_v1 = vpack.c.bf16 %v227_v61, %v226_v60  ;;  %v699_v2 = vld [vmem:[%s3615_s2 + $0x98] sm:$0xff]  ;;  %v698_v3 = vld [vmem:[%s3615_s2 + $0x90] sm:$0xff]  ;;  %v701_v6 = vld [vmem:[%s3615_s2 + $0xa8] sm:$0xff] }
  0x25   :  { %v210_v4 = vld [vmem:[#allocation2 + $0x70] sm:$0xff]  ;;  %v211_v5 = vld [vmem:[#allocation2 + $0x78] sm:$0xff]  ;;  %v700_v7 = vld [vmem:[%s3615_s2 + $0xa0] sm:$0xff] }
  0x26   :  { %750 = vperm.xlu1 %1950, %v687_v36   ;;  %745 = vperm.xlu0 %1949, %v686_v37   ;;  %v1923_v8 = vpack.c.bf16 %v211_v5, %v210_v4  ;;  %v703_v9 = vld [vmem:[%s3615_s2 + $0xb8] sm:$0xff]  ;;  %v702_v10 = vld [vmem:[%s3615_s2 + $0xb0] sm:$0xff]  ;;  %v705_v11 = vld [vmem:[%s3615_s2 + $0xc8] sm:$0xff] }
  0x27   :  { %1904 = vmatpush3.bf16.xpose.msra.mxu0 %v1903_v22  ;;  %1935 = vmatpush3.bf16.xpose.msra.mxu1 %v1903_v22  ;;  %v704_v12 = vld [vmem:[%s3615_s2 + $0xc0] sm:$0xff]  ;;  %v165_v13 = vld [vmem:[%s3613_s0 + $0x8] sm:$0xff]  ;;  %v707_v15 = vld [vmem:[%s3615_s2 + $0xd8] sm:$0xff] }
  0x28   :  { %1906 = vmatprep.subr.bf16.mxu0 %v1905_v24  ;;  %1928 = vmatprep.subr.bf16.mxu1 %v1905_v24  ;;  %v181_v14 = vld [vmem:[%s3613_s0 + $0x88] sm:$0xff]  ;;  %v706_v18 = vld [vmem:[%s3615_s2 + $0xd0] sm:$0xff]  ;;  %v708_v20 = vld [vmem:[%s3615_s2 + $0xe0] sm:$0xff] }
  0x29   :  { %v166_v19 = vld [vmem:[%s3613_s0 + $0x10] sm:$0xff]  ;;  %v167_v21 = vld [vmem:[%s3613_s0 + $0x18] sm:$0xff]  ;;  %v168_v25 = vld [vmem:[%s3613_s0 + $0x20] sm:$0xff] }
  0x2a   :  { %760 = vperm.xlu1 %1950, %v689_v42   ;;  %755 = vperm.xlu0 %1949, %v688_v43   ;;  %v183_v22 = vld [vmem:[%s3613_s0 + $0x98] sm:$0xff]  ;;  %v710_v24 = vld [vmem:[%s3615_s2 + $0xf0] sm:$0xff]  ;;  %v184_v26 = vld [vmem:[%s3613_s0 + $0xa0] sm:$0xff] }
  0x2b   :  { %v711_v23 = vld [vmem:[%s3615_s2 + $0xf8] sm:$0xff]  ;;  %v169_v27 = vld [vmem:[%s3613_s0 + $0x28] sm:$0xff]  ;;  %v170_v29 = vld [vmem:[%s3613_s0 + $0x30] sm:$0xff] }
  0x2c   :  { %v185_v28 = vld [vmem:[%s3613_s0 + $0xa8] sm:$0xff]  ;;  %v186_v30 = vld [vmem:[%s3613_s0 + $0xb0] sm:$0xff]  ;;  %v171_v31 = vld [vmem:[%s3613_s0 + $0x38] sm:$0xff] }
  0x2d   :  { %v187_v32 = vld [vmem:[%s3613_s0 + $0xb8] sm:$0xff]  ;;  %v172_v33 = vld [vmem:[%s3613_s0 + $0x40] sm:$0xff]  ;;  %v189_v36 = vld [vmem:[%s3613_s0 + $0xc8] sm:$0xff] }
  0x2e   :  { %770 = vperm.xlu1 %1950, %v691_v46   ;;  %765 = vperm.xlu0 %1949, %v690_v47   ;;  %v174_v37 = vld [vmem:[%s3613_s0 + $0x50] sm:$0xff]  ;;  %v175_v39 = vld [vmem:[%s3613_s0 + $0x58] sm:$0xff]  ;;  %v176_v41 = vld [vmem:[%s3613_s0 + $0x60] sm:$0xff] }
  0x2f   :  { %1908 = vmatpush3.bf16.xpose.msra.mxu0 %v1907_v34  ;;  %1936 = vmatpush3.bf16.xpose.msra.mxu1 %v1907_v34  ;;  %v188_v34 = vld [vmem:[%s3613_s0 + $0xc0] sm:$0xff]  ;;  %v190_v38 = vld [vmem:[%s3613_s0 + $0xd0] sm:$0xff]  ;;  %v191_v40 = vld [vmem:[%s3613_s0 + $0xd8] sm:$0xff] }
  0x30   :  { %1910 = vmatprep.subr.bf16.mxu0 %v1909_v35  ;;  %1929 = vmatprep.subr.bf16.mxu1 %v1909_v35  ;;  %v173_v35 = vld [vmem:[%s3613_s0 + $0x48] sm:$0xff]  ;;  %v192_v42 = vld [vmem:[%s3613_s0 + $0xe0] sm:$0xff]  ;;  %v194_v46 = vld [vmem:[%s3613_s0 + $0xf0] sm:$0xff] }
  0x31   :  { %v177_v43 = vld [vmem:[%s3613_s0 + $0x68] sm:$0xff]  ;;  %v179_v47 = vld [vmem:[%s3613_s0 + $0x78] sm:$0xff] }
  0x32   :  { %780 = vperm.xlu1 %1950, %v693_v52   ;;  %775 = vperm.xlu0 %1949, %v692_v53   ;;  %v195_v48 = vld [vmem:[%s3613_s0 + $0xf8] sm:$0xff]  ;;  %v880_v53 = vsub.s32 1, %v875_v50 }
  0x36   :  { %790 = vperm.xlu1 %1950, %v695_v56   ;;  %785 = vperm.xlu0 %1949, %v694_v57   ;;  %v876_v57 = vsub.s32 0, %v875_v50 }
  0x37   :  { %1912 = vmatpush3.bf16.xpose.msra.mxu0 %v1911_v44  ;;  %1937 = vmatpush3.bf16.xpose.msra.mxu1 %v1911_v44  ;;  %v193_v44 = vld [vmem:[%s3613_s0 + $0xe8] sm:$0xff] }
  0x38   :  { %1914 = vmatprep.subr.bf16.mxu0 %v1913_v45  ;;  %1930 = vmatprep.subr.bf16.mxu1 %v1913_v45  ;;  %v178_v45 = vld [vmem:[%s3613_s0 + $0x70] sm:$0xff] }
  0x3a   :  { %800 = vperm.xlu1 %1950, %v697_v62   ;;  %795 = vperm.xlu0 %1949, %v696_v63  }
  0x3e   :  { %810 = vperm.xlu1 %1950, %v699_v2   ;;  %805 = vperm.xlu0 %1949, %v698_v3  }
  0x3f   :  { %1916 = vmatpush3.bf16.xpose.msra.mxu0 %v1915_v54  ;;  %1938 = vmatpush3.bf16.xpose.msra.mxu1 %v1915_v54  ;;  %v712_v54 = vld [vmem:[%s3616_s3] sm:$0x3] }
  0x40   :  { %1918 = vmatprep.subr.bf16.mxu0 %v1917_v55  ;;  %1931 = vmatprep.subr.bf16.mxu1 %v1917_v55  ;;  %v2374_v58 = vrot.slane %v712_v54, %v880_v53  ;;  %v2376_v61 = vrot.slane %v712_v54, %v876_v57 }
  0x42   :  { %820 = vperm.xlu1 %1950, %v701_v6   ;;  %815 = vperm.xlu0 %1949, %v700_v7   ;;  %3620 = vst [vmem:[#allocation8_spill] sm:$0xff] %v2376_v61 }
  0x46   :  { %830 = vperm.xlu1 %1950, %v703_v9   ;;  %825 = vperm.xlu0 %1949, %v702_v10  }
  0x47   :  { %1920 = vmatpush3.bf16.xpose.msra.mxu0 %v1919_v0  ;;  %1939 = vmatpush3.bf16.xpose.msra.mxu1 %v1919_v0 }
  0x48   :  { %1922 = vmatprep.subr.bf16.mxu0 %v1921_v1  ;;  %1932 = vmatprep.subr.bf16.mxu1 %v1921_v1 }
  0x4a   :  { %840 = vperm.xlu1 %1950, %v705_v11   ;;  %835 = vperm.xlu0 %1949, %v704_v12  }
  0x4e   :  { %850 = vperm.xlu1 %1950, %v707_v15   ;;  %845 = vperm.xlu0 %1949, %v706_v18  }
  0x4f   :  { %1924 = vmatpush3.bf16.xpose.msra.mxu0 %v1923_v8  ;;  %1940 = vmatpush3.bf16.xpose.msra.mxu1 %v1923_v8 }
  0x52   :  { %855 = vperm.xlu0 %1949, %v708_v20  }
  0x56   :  { %1830 = vmatmul.mubr.f32.vlgmr.msra.gmra.mrb[0].mxu0 %v2174_v16  ;;  %1862 = vmatmul.mubr.f32.vlgmr.msra.gmra.mrb[0].mxu1 %v2180_v17  ;;  %v182_v16 = vld [vmem:[%s3613_s0 + $0x90] sm:$0xff]  ;;  %v709_v17 = vld [vmem:[%s3615_s2 + $0xe8] sm:$0xff]  ;;  %s2131_s0 = smov [#allocation5]  }
  0x57   :  { %1831 = vmatprep.mubr.f32.mxu0 %v165_v13  ;;  %1863 = vmatprep.mubr.f32.mxu1 %v181_v14  ;;  %s1785_s3 = sshll.u32 %s2131_s0, 4  ;;  %s1786_s3 = int_to_ptr.vmem [resolvable:$true] %s1785_s3 }
  0x58   :  { %860 = vperm.xlu1 %1950, %v709_v17   ;;  %865 = vperm.xlu0 %1949, %v710_v24   ;;  %s2101_s22 = scalar_lea.vmem %s1786_s3, 8192  ;;  %p2106_p9 = scmp.lt.s32.totalorder %s1786_s3, %s1786_s3 }
  0x59   :  { %p2102_p8 = scmp.ne.s32.totalorder %s1786_s3, %s2101_s22  ;;  %p2107_p10 = scmp.lt.s32.totalorder %s2101_s22, %s2101_s22 }
  0x5a   :  { %1832 = vmatmul.mubr.f32.gmra.mrb[2].mxu0 %v165_v13  ;;  %1864 = vmatmul.mubr.f32.gmra.mrb[2].mxu1 %v181_v14 }
  0x5b   :  { %1833 = vmatprep.mubr.f32.mxu0 %v166_v19  ;;  %1865 = vmatprep.mubr.f32.mxu1 %v182_v16  ;;  %p2108_p11 = por %p2107_p10, %p2106_p9 }
  0x5c   :  { %870 = vperm.xlu1 %1950, %v711_v23  }
  0x5d   :  { %p2109_p12 = pnand %p2108_p11, %p2102_p8 }
  0x5e   :  { %1834 = vmatmul.mubr.f32.gmra.mrb[4].mxu0 %v166_v19  ;;  %1866 = vmatmul.mubr.f32.gmra.mrb[4].mxu1 %v182_v16 }
  0x5f   :  { %1835 = vmatprep.mubr.f32.mxu0 %v167_v21  ;;  %1867 = vmatprep.mubr.f32.mxu1 %v183_v22 }
  0x62   :  { %1836 = vmatmul.mubr.f32.gmra.mrb[6].mxu0 %v167_v21  ;;  %1868 = vmatmul.mubr.f32.gmra.mrb[6].mxu1 %v183_v22 }
  0x63   :  { %1837 = vmatprep.mubr.f32.mxu0 %v168_v25  ;;  %1869 = vmatprep.mubr.f32.mxu1 %v184_v26 }
  0x66   :  { %1838 = vmatmul.mubr.f32.gmra.mrb[8].mxu0 %v168_v25  ;;  %1870 = vmatmul.mubr.f32.gmra.mrb[8].mxu1 %v184_v26 }
  0x67   :  { %1839 = vmatprep.mubr.f32.mxu0 %v169_v27  ;;  %1871 = vmatprep.mubr.f32.mxu1 %v185_v28 }
  0x6a   :  { %1840 = vmatmul.mubr.f32.gmra.mrb[10].mxu0 %v169_v27  ;;  %1872 = vmatmul.mubr.f32.gmra.mrb[10].mxu1 %v185_v28 }
  0x6b   :  { %1841 = vmatprep.mubr.f32.mxu0 %v170_v29  ;;  %1873 = vmatprep.mubr.f32.mxu1 %v186_v30 }
  0x6e   :  { %1842 = vmatmul.mubr.f32.gmra.mrb[12].mxu0 %v170_v29  ;;  %1874 = vmatmul.mubr.f32.gmra.mrb[12].mxu1 %v186_v30 }
  0x6f   :  { %1843 = vmatprep.mubr.f32.mxu0 %v171_v31  ;;  %1875 = vmatprep.mubr.f32.mxu1 %v187_v32 }
  0x72   :  { %1844 = vmatmul.mubr.f32.gmra.mrb[14].mxu0 %v171_v31  ;;  %1876 = vmatmul.mubr.f32.gmra.mrb[14].mxu1 %v187_v32 }
  0x73   :  { %1845 = vmatprep.mubr.f32.mxu0 %v172_v33  ;;  %1877 = vmatprep.mubr.f32.mxu1 %v188_v34 }
  0x76   :  { %1846 = vmatmul.mubr.f32.gmra.mrb[16].mxu0 %v172_v33  ;;  %1878 = vmatmul.mubr.f32.gmra.mrb[16].mxu1 %v188_v34 }
  0x77   :  { %1847 = vmatprep.mubr.f32.mxu0 %v173_v35  ;;  %1879 = vmatprep.mubr.f32.mxu1 %v189_v36 }
  0x7a   :  { %1848 = vmatmul.mubr.f32.gmra.mrb[18].mxu0 %v173_v35  ;;  %1880 = vmatmul.mubr.f32.gmra.mrb[18].mxu1 %v189_v36 }
  0x7b   :  { %1849 = vmatprep.mubr.f32.mxu0 %v174_v37  ;;  %1881 = vmatprep.mubr.f32.mxu1 %v190_v38 }
  0x7e   :  { %1850 = vmatmul.mubr.f32.gmra.mrb[20].mxu0 %v174_v37  ;;  %1882 = vmatmul.mubr.f32.gmra.mrb[20].mxu1 %v190_v38 }
  0x7f   :  { %1851 = vmatprep.mubr.f32.mxu0 %v175_v39  ;;  %1883 = vmatprep.mubr.f32.mxu1 %v191_v40 }
  0x82   :  { %1852 = vmatmul.mubr.f32.gmra.mrb[22].mxu0 %v175_v39  ;;  %1884 = vmatmul.mubr.f32.gmra.mrb[22].mxu1 %v191_v40 }
  0x83   :  { %1853 = vmatprep.mubr.f32.mxu0 %v176_v41  ;;  %1885 = vmatprep.mubr.f32.mxu1 %v192_v42 }
  0x86   :  { %1854 = vmatmul.mubr.f32.gmra.mrb[24].mxu0 %v176_v41  ;;  %1886 = vmatmul.mubr.f32.gmra.mrb[24].mxu1 %v192_v42 }
  0x87   :  { %1855 = vmatprep.mubr.f32.mxu0 %v177_v43  ;;  %1887 = vmatprep.mubr.f32.mxu1 %v193_v44 }
  0x8a   :  { %1856 = vmatmul.mubr.f32.gmra.mrb[26].mxu0 %v177_v43  ;;  %1888 = vmatmul.mubr.f32.gmra.mrb[26].mxu1 %v193_v44 }
  0x8b   :  { %1857 = vmatprep.mubr.f32.mxu0 %v178_v45  ;;  %1889 = vmatprep.mubr.f32.mxu1 %v194_v46 }
  0x8e   :  { %1858 = vmatmul.mubr.f32.gmra.mrb[28].mxu0 %v178_v45  ;;  %1890 = vmatmul.mubr.f32.gmra.mrb[28].mxu1 %v194_v46 }
  0x8f   :  { %1859 = vmatprep.mubr.f32.mxu0 %v179_v47  ;;  %1891 = vmatprep.mubr.f32.mxu1 %v195_v48 }
  0x92   :  { %1860 = vmatmul.mubr.f32.gmra.mrb[30].mxu0 %v179_v47  ;;  %1892 = vmatmul.mubr.f32.gmra.mrb[30].mxu1 %v195_v48 }
  0x99   :  { %v726_v51 = vpop.permute.xlu1 %725  ;;  %v716_v52 = vpop.permute.xlu0 %715 }
  0x9a   :  { %v2442_v36 = vadd.f32 %v2376_v61, %v726_v51  ;;  %v2445_v39 = vadd.f32 %v2374_v58, %v726_v51  ;;  %v884_v40 = vadd.f32 %v2376_v61, %v716_v52  ;;  %v885_v41 = vadd.f32 %v2374_v58, %v716_v52 }
  0x9d   :  { %v731_v55 = vpop.permute.xlu1 %730  ;;  %v721_v56 = vpop.permute.xlu0 %720 }
  0x9e   :  { %v2450_v42 = vadd.f32 %v2376_v61, %v731_v55  ;;  %v2453_v43 = vadd.f32 %v2374_v58, %v731_v55  ;;  %v2456_v44 = vadd.f32 %v2376_v61, %v721_v56  ;;  %v2459_v45 = vadd.f32 %v2374_v58, %v721_v56 }
  0xa1   :  { %v741_v59 = vpop.permute.xlu1 %740  ;;  %v736_v60 = vpop.permute.xlu0 %735 }
  0xa2   :  { %v2379_v62 = vadd.f32 %v2374_v58, %v741_v59  ;;  %v2462_v46 = vadd.f32 %v2376_v61, %v741_v59  ;;  %v2465_v47 = vadd.f32 %v2376_v61, %v736_v60  ;;  %v2468_v48 = vadd.f32 %v2374_v58, %v736_v60 }
  0xa5   :  { %v751_v63 = vpop.permute.xlu1 %750  ;;  %v746_v0 = vpop.permute.xlu0 %745 }
  0xa6   :  { %v2382_v1 = vadd.f32 %v2376_v61, %v751_v63  ;;  %v2385_v2 = vadd.f32 %v2374_v58, %v751_v63  ;;  %v2388_v3 = vadd.f32 %v2376_v61, %v746_v0  ;;  %v2391_v4 = vadd.f32 %v2374_v58, %v746_v0 }
  0xa9   :  { %v761_v5 = vpop.permute.xlu1 %760  ;;  %v756_v6 = vpop.permute.xlu0 %755 }
  0xaa   :  { %v2394_v7 = vadd.f32 %v2376_v61, %v761_v5  ;;  %v2397_v8 = vadd.f32 %v2374_v58, %v761_v5  ;;  %v2400_v9 = vadd.f32 %v2376_v61, %v756_v6  ;;  %v2403_v10 = vadd.f32 %v2374_v58, %v756_v6 }
  0xac   :  { %3621 = vst [vmem:[#allocation9_spill] sm:$0xff] %v2394_v7  ;;  %3622 = vst [vmem:[#allocation10_spill] sm:$0xff] %v2397_v8 }
  0xad   :  { %3623 = vst [vmem:[#allocation11_spill] sm:$0xff] %v2400_v9  ;;  %3624 = vst [vmem:[#allocation12_spill] sm:$0xff] %v2403_v10  ;;  %v771_v11 = vpop.permute.xlu1 %770  ;;  %v766_v12 = vpop.permute.xlu0 %765 }
  0xae   :  { %v2406_v13 = vadd.f32 %v2376_v61, %v771_v11  ;;  %v2409_v14 = vadd.f32 %v2374_v58, %v771_v11  ;;  %v2412_v15 = vadd.f32 %v2376_v61, %v766_v12  ;;  %v2415_v18 = vadd.f32 %v2374_v58, %v766_v12 }
  0xb0   :  { %3625 = vst [vmem:[#allocation13_spill] sm:$0xff] %v2406_v13  ;;  %3626 = vst [vmem:[#allocation14_spill] sm:$0xff] %v2409_v14 }
  0xb1   :  { %3627 = vst [vmem:[#allocation15_spill] sm:$0xff] %v2412_v15  ;;  %3628 = vst [vmem:[#allocation16_spill] sm:$0xff] %v2415_v18  ;;  %v781_v19 = vpop.permute.xlu1 %780  ;;  %v776_v16 = vpop.permute.xlu0 %775 }
  0xb2   :  { %v2418_v17 = vadd.f32 %v2376_v61, %v781_v19  ;;  %v2421_v20 = vadd.f32 %v2374_v58, %v781_v19  ;;  %v2424_v21 = vadd.f32 %v2376_v61, %v776_v16  ;;  %v2427_v22 = vadd.f32 %v2374_v58, %v776_v16 }
  0xb4   :  { %3629 = vst [vmem:[#allocation17_spill] sm:$0xff] %v2418_v17  ;;  %3630 = vst [vmem:[#allocation18_spill] sm:$0xff] %v2421_v20 }
  0xb5   :  { %3631 = vst [vmem:[#allocation19_spill] sm:$0xff] %v2424_v21  ;;  %3632 = vst [vmem:[#allocation20_spill] sm:$0xff] %v2427_v22  ;;  %v791_v23 = vpop.permute.xlu1 %790  ;;  %v786_v24 = vpop.permute.xlu0 %785 }
  0xb6   :  { %v2430_v25 = vadd.f32 %v2376_v61, %v791_v23  ;;  %v2433_v26 = vadd.f32 %v2374_v58, %v791_v23  ;;  %v2436_v27 = vadd.f32 %v2376_v61, %v786_v24  ;;  %v2439_v28 = vadd.f32 %v2374_v58, %v786_v24 }
  0xb8   :  { %3633 = vst [vmem:[#allocation21_spill] sm:$0xff] %v2430_v25  ;;  %3634 = vst [vmem:[#allocation22_spill] sm:$0xff] %v2433_v26 }
  0xb9   :  { %3635 = vst [vmem:[#allocation23_spill] sm:$0xff] %v2436_v27  ;;  %3636 = vst [vmem:[#allocation24_spill] sm:$0xff] %v2439_v28  ;;  %v801_v29 = vpop.permute.xlu1 %800  ;;  %v796_v30 = vpop.permute.xlu0 %795 }
  0xba   :  { %v2471_v49 = vadd.f32 %v2376_v61, %v801_v29  ;;  %v2474_v50 = vadd.f32 %v2374_v58, %v801_v29  ;;  %v916_v53 = vadd.f32 %v2376_v61, %v796_v30  ;;  %v917_v54 = vadd.f32 %v2374_v58, %v796_v30 }
  0xbd   :  { %v811_v31 = vpop.permute.xlu1 %810  ;;  %v806_v32 = vpop.permute.xlu0 %805 }
  0xbe   :  { %v2479_v57 = vadd.f32 %v2376_v61, %v811_v31  ;;  %v2482_v59 = vadd.f32 %v2374_v58, %v811_v31  ;;  %v2485_v60 = vadd.f32 %v2376_v61, %v806_v32  ;;  %v2488_v63 = vadd.f32 %v2374_v58, %v806_v32 }
  0xc1   :  { %v821_v33 = vpop.permute.xlu1 %820  ;;  %v816_v34 = vpop.permute.xlu0 %815 }
  0xc2   :  { %v2491_v12 = vadd.f32 %v2376_v61, %v821_v33  ;;  %v2494_v19 = vadd.f32 %v2374_v58, %v821_v33  ;;  %v2497_v30 = vadd.f32 %v2376_v61, %v816_v34  ;;  %v2500_v28 = vadd.f32 %v2374_v58, %v816_v34 }
  0xc5   :  { %v831_v35 = vpop.permute.xlu1 %830  ;;  %v826_v37 = vpop.permute.xlu0 %825 }
  0xc6   :  { %v2520_v34 = vadd.f32 %v2374_v58, %v826_v37 }
  0xc9   :  { %v841_v38 = vpop.permute.xlu1 %840  ;;  %v836_v0 = vpop.permute.xlu0 %835 }
  0xca   :  { %v2541_v22 = vadd.f32 %v2374_v58, %v836_v0 }
  0xcc   :  { %3640 = vst [vmem:[#allocation28_spill] sm:$0xff] %v2541_v22 }
  0xcd   :  { %v851_v11 = vpop.permute.xlu1 %850  ;;  %v846_v20 = vpop.permute.xlu0 %845 }
  0xce   :  { %v2544_v21 = vadd.f32 %v2376_v61, %v851_v11 }
  0xd0   :  { %3641 = vst [vmem:[#allocation29_spill] sm:$0xff] %v2544_v21 }
 0x129   :  { %v294_v51 = vpop.f32.mrb[0].mxu0  ;;  %v390_v52 = vpop.f32.mrb[0].mxu1 }
 0x12a   :  { %v296_v55 = vpop.f32.mrb[1].mxu0  ;;  %v392_v56 = vpop.f32.mrb[1].mxu1  ;;  %v948_v5 = vmul.f32 2.0, %v294_v51  ;;  %v980_v6 = vmul.f32 2.0, %v390_v52 }
 0x12b   :  { %v949_v16 = vmul.f32 2.0, %v296_v55  ;;  %v981_v23 = vmul.f32 2.0, %v392_v56  ;;  %v2507_v55 = vadd.f32 %v2376_v61, %v831_v35  ;;  %v2510_v56 = vadd.f32 %v2374_v58, %v831_v35 }
 0x12c   :  { %v1012_v31 = vsub.f32 %v884_v40, %v948_v5  ;;  %v1044_v32 = vsub.f32 %v916_v53, %v980_v6  ;;  %v2513_v40 = vadd.f32 %v2376_v61, %v826_v37  ;;  %v2523_v5 = vadd.f32 %v2376_v61, %v841_v38 }
 0x12d   :  { %v300_v24 = vpop.f32.mrb[2].mxu0  ;;  %v396_v29 = vpop.f32.mrb[2].mxu1  ;;  %v1013_v51 = vsub.f32 %v885_v41, %v949_v16  ;;  %v1045_v52 = vsub.f32 %v917_v54, %v981_v23  ;;  %v2535_v37 = vadd.f32 %v2376_v61, %v836_v0 }
 0x12e   :  { %v302_v26 = vpop.f32.mrb[3].mxu0  ;;  %v398_v25 = vpop.f32.mrb[3].mxu1  ;;  %v2502_v27 = vmax.f32 %v1012_v31, 0.0  ;;  %v2504_v33 = vmax.f32 %v1044_v32, 0.0  ;;  %3637 = vst [vmem:[#allocation25_spill] sm:$0xff] %v2523_v5  ;;  %v950_v23 = vmul.f32 2.0, %v300_v24 }
 0x12f   :  { %v2515_v53 = vmax.f32 %v1013_v51, 0.0  ;;  %v2526_v6 = vmax.f32 %v1045_v52, 0.0  ;;  %v982_v31 = vmul.f32 2.0, %v396_v29  ;;  %v951_v32 = vmul.f32 2.0, %v302_v26  ;;  %3639 = vst [vmem:[#allocation27_spill] sm:$0xff] %v2535_v37  ;;  %v2538_v52 = vpop.permute.xlu1 %860 }
 0x130   :  { %1951 = vrsqrt.f32 %v2502_v27  ;;  %v2532_v51 = vadd.f32 %v2374_v58, %v841_v38  ;;  %v983_v17 = vmul.f32 2.0, %v398_v25  ;;  %v2547_v26 = vadd.f32 %v2374_v58, %v851_v11 }
 0x131   :  { %v306_v41 = vpop.f32.mrb[4].mxu0  ;;  %v2517_v54 = vpop.f32.mrb[4].mxu1  ;;  %1953 = vrsqrt.f32 %v2504_v33  ;;  %v2550_v38 = vadd.f32 %v2376_v61, %v846_v20  ;;  %vm1206_vm0 = vcmp.eq.f32.partialorder %v2502_v27, inf  ;;  %v2559_v25 = vadd.f32 %v2374_v58, %v846_v20 }
 0x132   :  { %v308_v35 = vpop.f32.mrb[5].mxu0  ;;  %v2528_v16 = vpop.f32.mrb[5].mxu1  ;;  %3638 = vst [vmem:[#allocation26_spill] sm:$0xff] %v2532_v51  ;;  %1955 = vrsqrt.f32 %v2515_v53  ;;  %3642 = vst [vmem:[#allocation30_spill] sm:$0xff] %v2547_v26  ;;  %v2563_v0 = vadd.f32 %v2376_v61, %v2538_v52  ;;  %vm1208_vm1 = vcmp.eq.f32.partialorder %v2502_v27, 0.0  ;;  %v1014_v14 = vsub.f32 %v2456_v44, %v950_v23 }
 0x133   :  { %3643 = vst [vmem:[#allocation31_spill] sm:$0xff] %v2550_v38  ;;  %1957 = vrsqrt.f32 %v2526_v6  ;;  %3644 = vst [vmem:[#allocation32_spill] sm:$0xff] %v2559_v25  ;;  %v1046_v21 = vsub.f32 %v2471_v49, %v982_v31  ;;  %v1015_v13 = vsub.f32 %v2459_v45, %v951_v32  ;;  %vm1140_vm2 = vcmp.gt.f32.partialorder %v2502_v27, 0.0 }
 0x134   :  { %3645 = vst [vmem:[#allocation33_spill] sm:$0xff] %v2563_v0  ;;  %v1209_v20 = vand.u32 2147483648, %v2502_v27  ;;  %vm1430_vm3 = vcmp.eq.f32.partialorder %v2504_v33, inf  ;;  %vm1432_vm4 = vcmp.eq.f32.partialorder %v2504_v33, 0.0  ;;  %v1047_v0 = vsub.f32 %v2474_v50, %v983_v17 }
 0x135   :  { %v2552_v24 = vpop.f32.mrb[6].mxu0  ;;  %v2554_v29 = vpop.f32.mrb[6].mxu1  ;;  %vm1172_vm5 = vcmp.gt.f32.partialorder %v2504_v33, 0.0  ;;  %v1433_v61 = vand.u32 2147483648, %v2504_v33  ;;  %v2580_v25 = vmax.f32 %v1014_v14, 0.0  ;;  %v2582_v44 = vmax.f32 %v1046_v21, 0.0 }
 0x136   :  { %v2565_v11 = vpop.f32.mrb[7].mxu0  ;;  %v2567_v26 = vpop.f32.mrb[7].mxu1  ;;  %vm1141_vm6 = vcmp.gt.f32.partialorder %v2515_v53, 0.0  ;;  %vm1213_vm7 = vcmp.eq.f32.partialorder %v2515_v53, inf  ;;  %v2590_v23 = vmax.f32 %v1015_v13, 0.0  ;;  %vm1215_vm8 = vcmp.eq.f32.partialorder %v2515_v53, 0.0 }
 0x137   :  { %v1216_v14 = vand.u32 2147483648, %v2515_v53  ;;  %1959 = vrsqrt.f32 %v2580_v25  ;;  %vm1173_vm9 = vcmp.gt.f32.partialorder %v2526_v6, 0.0  ;;  %vm1437_vm10 = vcmp.eq.f32.partialorder %v2526_v6, inf }
 0x138   :  { %1961 = vrsqrt.f32 %v2582_v44  ;;  %v2602_v50 = vmax.f32 %v1047_v0, 0.0  ;;  %vm1439_vm11 = vcmp.eq.f32.partialorder %v2526_v6, 0.0  ;;  %v1440_v18 = vand.u32 2147483648, %v2526_v6 }
 0x139   :  { %v2584_v49 = vpop.f32.mrb[8].mxu0  ;;  %v2586_v45 = vpop.f32.mrb[8].mxu1  ;;  %v952_v38 = vmul.f32 2.0, %v306_v41  ;;  %1963 = vrsqrt.f32 %v2590_v23  ;;  %v984_v0 = vmul.f32 2.0, %v2517_v54  ;;  %v953_v7 = vmul.f32 2.0, %v308_v35 }
 0x13a   :  { %v2592_v31 = vpop.f32.mrb[9].mxu0  ;;  %v2594_v17 = vpop.f32.mrb[9].mxu1  ;;  %vm1220_vm12 = vcmp.eq.f32.partialorder %v2580_v25, inf  ;;  %v2624_v37 = vmul.f32 2.0, %v2528_v16  ;;  %vm1222_vm13 = vcmp.eq.f32.partialorder %v2580_v25, 0.0  ;;  %1965 = vrsqrt.f32 %v2602_v50 }
 0x13b   :  { %v1952_v21 = vpop.eup %1951  ;;  %vm1142_vm14 = vcmp.gt.f32.partialorder %v2580_v25, 0.0  ;;  %vm1174_vm15 = vcmp.gt.f32.partialorder %v2582_v44, 0.0 }
 0x13c   :  { %v1954_v13 = vpop.eup %1953  ;;  %v1205_v32 = vmul.f32 %v1952_v21, %v2502_v27 }
 0x13d   :  { %v2607_v15 = vpop.f32.mrb[10].mxu0  ;;  %v2609_v51 = vpop.f32.mrb[10].mxu1  ;;  %v1429_v5 = vmul.f32 %v1954_v13, %v2504_v33 }
 0x13e   :  { %v1956_v8 = vpop.eup %1955  ;;  %v2614_v22 = vpop.f32.mrb[11].mxu0  ;;  %v1207_v41 = vsel %vm1206_vm0, %v2502_v27, %v1205_v32  ;;  %vm1444_vm0 = vcmp.eq.f32.partialorder %v2582_v44, inf }
 0x13f   :  { %v2616_v21 = vpop.f32.mrb[11].mxu1  ;;  %v1212_v10 = vmul.f32 %v1956_v8, %v2515_v53  ;;  %v1958_v13 = vpop.eup %1957  ;;  %v1210_v54 = vsel %vm1208_vm1, %v1209_v20, %v1207_v41  ;;  %v1431_v35 = vsel %vm1430_vm3, %v2504_v33, %v1429_v5  ;;  %vm1446_vm1 = vcmp.eq.f32.partialorder %v2582_v44, 0.0 }
 0x140   :  { %v1652_v8 = vsel %vm1140_vm2, %v1210_v54, 0.0  ;;  %v1434_v32 = vsel %vm1432_vm4, %v1433_v61, %v1431_v35  ;;  %v1436_v20 = vmul.f32 %v1958_v13, %v2526_v6  ;;  %v1223_v61 = vand.u32 2147483648, %v2580_v25 }
 0x141   :  { %v1214_v16 = vsel %vm1213_vm7, %v2515_v53, %v1212_v10  ;;  %v2642_v41 = vpop.f32.mrb[12].mxu0  ;;  %v2644_v5 = vpop.f32.mrb[12].mxu1  ;;  %1716 = vst [vmem:[#allocation5] sm:$0xff] %v1652_v8  ;;  %v1684_v27 = vsel %vm1172_vm5, %v1434_v32, 0.0  ;;  %v1016_v8 = vsub.f32 %v2442_v36, %v952_v38  ;;  %vm1143_vm2 = vcmp.gt.f32.partialorder %v2590_v23, 0.0 }
 0x142   :  { %v1217_v54 = vsel %vm1215_vm8, %v1216_v14, %v1214_v16  ;;  %v2652_v10 = vpop.f32.mrb[13].mxu0  ;;  %v2654_v13 = vpop.f32.mrb[13].mxu1  ;;  %1748 = vst [vmem:[#allocation5 + $0x100] sm:$0xff] %v1684_v27  ;;  %v1438_v33 = vsel %vm1437_vm10, %v2526_v6, %v1436_v20  ;;  %v1048_v14 = vsub.f32 %v2485_v60, %v984_v0  ;;  %v1017_v16 = vsub.f32 %v2445_v39, %v953_v7 }
 0x143   :  { %v1653_v35 = vsel %vm1141_vm6, %v1217_v54, 0.0  ;;  %v1441_v32 = vsel %vm1439_vm11, %v1440_v18, %v1438_v33  ;;  %v1960_v53 = vpop.eup %1959  ;;  %v1447_v20 = vand.u32 2147483648, %v2582_v44  ;;  %v2671_v54 = vmax.f32 %v1016_v8, 0.0 }
 0x144   :  { %1717 = vst [vmem:[#allocation5 + $0x8] sm:$0xff] %v1653_v35  ;;  %v1685_v27 = vsel %vm1173_vm9, %v1441_v32, 0.0  ;;  %v2673_v36 = vmax.f32 %v1048_v14, 0.0  ;;  %v1962_v18 = vpop.eup %1961  ;;  %v1219_v0 = vmul.f32 %v1960_v53, %v2580_v25  ;;  %vm1227_vm3 = vcmp.eq.f32.partialorder %v2590_v23, inf }
 0x145   :  { %v2675_v60 = vpop.f32.mrb[14].mxu0  ;;  %v2677_v38 = vpop.f32.mrb[14].mxu1  ;;  %1749 = vst [vmem:[#allocation5 + $0x108] sm:$0xff] %v1685_v27  ;;  %v1049_v7 = vsub.f32 %v2488_v63, %v2624_v37  ;;  %v1443_v35 = vmul.f32 %v1962_v18, %v2582_v44  ;;  %vm1229_vm4 = vcmp.eq.f32.partialorder %v2590_v23, 0.0  ;;  %1967 = vrsqrt.f32 %v2671_v54 }
 0x146   :  { %v2684_v39 = vpop.f32.mrb[15].mxu0  ;;  %v2686_v6 = vpop.f32.mrb[15].mxu1  ;;  %v1221_v8 = vsel %vm1220_vm12, %v2580_v25, %v1219_v0  ;;  %v1230_v14 = vand.u32 2147483648, %v2590_v23  ;;  %vm1175_vm5 = vcmp.gt.f32.partialorder %v2602_v50, 0.0  ;;  %v2696_v63 = vmax.f32 %v1017_v16, 0.0 }
 0x147   :  { %v1964_v33 = vpop.eup %1963  ;;  %v1224_v37 = vsel %vm1222_vm13, %v1223_v61, %v1221_v8  ;;  %v1445_v32 = vsel %vm1444_vm0, %v2582_v44, %v1443_v35  ;;  %1969 = vrsqrt.f32 %v2673_v36  ;;  %vm1451_vm6 = vcmp.eq.f32.partialorder %v2602_v50, inf }
 0x148   :  { %v1226_v53 = vmul.f32 %v1964_v33, %v2590_v23  ;;  %v1966_v0 = vpop.eup %1965  ;;  %v1654_v16 = vsel %vm1142_vm14, %v1224_v37, 0.0  ;;  %v1448_v9 = vsel %vm1446_vm1, %v1447_v20, %v1445_v32  ;;  %v2714_v61 = vmax.f32 %v1049_v7, 0.0 }
 0x149   :  { %v2705_v27 = vpop.f32.mrb[16].mxu0  ;;  %v2707_v18 = vpop.f32.mrb[16].mxu1  ;;  %1718 = vst [vmem:[#allocation5 + $0x10] sm:$0xff] %v1654_v16  ;;  %v1686_v8 = vsel %vm1174_vm15, %v1448_v9, 0.0  ;;  %v1450_v37 = vmul.f32 %v1966_v0, %v2602_v50  ;;  %v954_v20 = vmul.f32 2.0, %v2552_v24  ;;  %v1454_v32 = vand.u32 2147483648, %v2602_v50 }
 0x14a   :  { %v2716_v35 = vpop.f32.mrb[17].mxu0  ;;  %v2718_v33 = vpop.f32.mrb[17].mxu1  ;;  %v1228_v25 = vsel %vm1227_vm3, %v2590_v23, %v1226_v53  ;;  %1750 = vst [vmem:[#allocation5 + $0x110] sm:$0xff] %v1686_v8  ;;  %1971 = vrsqrt.f32 %v2696_v63  ;;  %vm1453_vm7 = vcmp.eq.f32.partialorder %v2602_v50, 0.0  ;;  %vm1144_vm8 = vcmp.gt.f32.partialorder %v2671_v54, 0.0 }
 0x14b   :  { %v1231_v7 = vsel %vm1229_vm4, %v1230_v14, %v1228_v25  ;;  %v1452_v9 = vsel %vm1451_vm6, %v2602_v50, %v1450_v37  ;;  %vm1234_vm9 = vcmp.eq.f32.partialorder %v2671_v54, inf  ;;  %vm1236_vm10 = vcmp.eq.f32.partialorder %v2671_v54, 0.0 }
 0x14c   :  { %v1655_v44 = vsel %vm1143_vm2, %v1231_v7, 0.0  ;;  %v1455_v0 = vsel %vm1453_vm7, %v1454_v32, %v1452_v9  ;;  %1973 = vrsqrt.f32 %v2714_v61  ;;  %v1237_v8 = vand.u32 2147483648, %v2671_v54 }
 0x14d   :  { %v2736_v53 = vpop.f32.mrb[18].mxu0  ;;  %v2738_v24 = vpop.f32.mrb[18].mxu1  ;;  %1719 = vst [vmem:[#allocation5 + $0x18] sm:$0xff] %v1655_v44  ;;  %v1687_v16 = vsel %vm1175_vm5, %v1455_v0, 0.0  ;;  %vm1176_vm11 = vcmp.gt.f32.partialorder %v2673_v36, 0.0  ;;  %v1018_v25 = vsub.f32 %v2450_v42, %v954_v20  ;;  %vm1458_vm12 = vcmp.eq.f32.partialorder %v2673_v36, inf }
 0x14e   :  { %v2743_v23 = vpop.f32.mrb[19].mxu0  ;;  %v2745_v14 = vpop.f32.mrb[19].mxu1  ;;  %1751 = vst [vmem:[#allocation5 + $0x118] sm:$0xff] %v1687_v16  ;;  %v986_v37 = vmul.f32 2.0, %v2554_v29  ;;  %vm1460_vm13 = vcmp.eq.f32.partialorder %v2673_v36, 0.0  ;;  %v1461_v32 = vand.u32 2147483648, %v2673_v36 }
 0x14f   :  { %3646 = vst [vmem:[#allocation34_spill] sm:$0xff] %v2743_v23  ;;  %3647 = vst [vmem:[#allocation35_spill] sm:$0xff] %v2745_v14  ;;  %v1968_v7 = vpop.eup %1967  ;;  %v2756_v44 = vmax.f32 %v1018_v25, 0.0  ;;  %v955_v20 = vmul.f32 2.0, %v2565_v11  ;;  %v987_v16 = vmul.f32 2.0, %v2567_v26  ;;  %vm1145_vm14 = vcmp.gt.f32.partialorder %v2696_v63, 0.0 }
 0x150   :  { %v1233_v0 = vmul.f32 %v1968_v7, %v2671_v54  ;;  %v1050_v42 = vsub.f32 %v2479_v57, %v986_v37  ;;  %vm1241_vm15 = vcmp.eq.f32.partialorder %v2696_v63, inf  ;;  %vm1243_vm0 = vcmp.eq.f32.partialorder %v2696_v63, 0.0 }
 0x151   :  { %v2758_v50 = vpop.f32.mrb[20].mxu0  ;;  %v2760_v9 = vpop.f32.mrb[20].mxu1  ;;  %1975 = vrsqrt.f32 %v2756_v44  ;;  %v1244_v26 = vand.u32 2147483648, %v2696_v63  ;;  %v1019_v7 = vsub.f32 %v2453_v43, %v955_v20  ;;  %vm1177_vm1 = vcmp.gt.f32.partialorder %v2714_v61, 0.0 }
 0x152   :  { %3648 = vst [vmem:[#allocation36_spill] sm:$0xff] %v2758_v50  ;;  %3649 = vst [vmem:[#allocation37_spill] sm:$0xff] %v2760_v9  ;;  %v2766_v29 = vpop.f32.mrb[21].mxu0  ;;  %v2768_v14 = vpop.f32.mrb[21].mxu1  ;;  %v1235_v57 = vsel %vm1234_vm9, %v2671_v54, %v1233_v0  ;;  %v2779_v25 = vmax.f32 %v1050_v42, 0.0  ;;  %vm1465_vm2 = vcmp.eq.f32.partialorder %v2714_v61, inf }
 0x153   :  { %3650 = vst [vmem:[#allocation38_spill] sm:$0xff] %v2766_v29  ;;  %3651 = vst [vmem:[#allocation39_spill] sm:$0xff] %v2768_v14  ;;  %v1970_v23 = vpop.eup %1969  ;;  %v1238_v37 = vsel %vm1236_vm10, %v1237_v8, %v1235_v57  ;;  %v1051_v14 = vsub.f32 %v2482_v59, %v987_v16  ;;  %v956_v29 = vmul.f32 2.0, %v2584_v49  ;;  %v1468_v16 = vand.u32 2147483648, %v2714_v61 }
 0x154   :  { %v1457_v11 = vmul.f32 %v1970_v23, %v2673_v36  ;;  %v1972_v0 = vpop.eup %1971  ;;  %v1656_v23 = vsel %vm1144_vm8, %v1238_v37, 0.0  ;;  %1977 = vrsqrt.f32 %v2779_v25  ;;  %v2808_v57 = vmax.f32 %v1019_v7, 0.0 }
 0x155   :  { %v2786_v9 = vpop.f32.mrb[22].mxu0  ;;  %v2788_v50 = vpop.f32.mrb[22].mxu1  ;;  %1720 = vst [vmem:[#allocation5 + $0x20] sm:$0xff] %v1656_v23  ;;  %v1240_v49 = vmul.f32 %v1972_v0, %v2696_v63  ;;  %v1020_v0 = vsub.f32 %v2465_v47, %v956_v29  ;;  %vm1467_vm3 = vcmp.eq.f32.partialorder %v2714_v61, 0.0  ;;  %vm1146_vm4 = vcmp.gt.f32.partialorder %v2756_v44, 0.0 }
 0x156   :  { %v1459_v42 = vsel %vm1458_vm12, %v2673_v36, %v1457_v11  ;;  %v2796_v8 = vpop.f32.mrb[23].mxu0  ;;  %v2798_v43 = vpop.f32.mrb[23].mxu1  ;;  %v2810_v11 = vmax.f32 %v1051_v14, 0.0  ;;  %1979 = vrsqrt.f32 %v2808_v57  ;;  %v988_v14 = vmul.f32 2.0, %v2586_v45 }
 0x157   :  { %v1462_v59 = vsel %vm1460_vm13, %v1461_v32, %v1459_v42  ;;  %v1974_v54 = vpop.eup %1973  ;;  %v1242_v32 = vsel %vm1241_vm15, %v2696_v63, %v1240_v49  ;;  %vm1248_vm5 = vcmp.eq.f32.partialorder %v2756_v44, inf  ;;  %vm1250_vm6 = vcmp.eq.f32.partialorder %v2756_v44, 0.0 }
 0x158   :  { %v1688_v20 = vsel %vm1176_vm11, %v1462_v59, 0.0  ;;  %v1464_v37 = vmul.f32 %v1974_v54, %v2714_v61  ;;  %v1245_v36 = vsel %vm1243_vm0, %v1244_v26, %v1242_v32  ;;  %1981 = vrsqrt.f32 %v2810_v11 }
 0x159   :  { %1752 = vst [vmem:[#allocation5 + $0x120] sm:$0xff] %v1688_v20  ;;  %v2817_v23 = vpop.f32.mrb[24].mxu0  ;;  %v2819_v42 = vpop.f32.mrb[24].mxu1  ;;  %v1657_v49 = vsel %vm1145_vm14, %v1245_v36, 0.0  ;;  %v1251_v26 = vand.u32 2147483648, %v2756_v44  ;;  %vm1178_vm7 = vcmp.gt.f32.partialorder %v2779_v25, 0.0 }
 0x15a   :  { %v2825_v7 = vpop.f32.mrb[25].mxu0  ;;  %v2827_v59 = vpop.f32.mrb[25].mxu1  ;;  %v1466_v47 = vsel %vm1465_vm2, %v2714_v61, %v1464_v37  ;;  %1721 = vst [vmem:[#allocation5 + $0x28] sm:$0xff] %v1657_v49  ;;  %v2843_v54 = vmax.f32 %v1020_v0, 0.0  ;;  %v1052_v37 = vsub.f32 %v2497_v30, %v988_v14  ;;  %v957_v36 = vmul.f32 2.0, %v2592_v31 }
 0x15b   :  { %v1469_v29 = vsel %vm1467_vm3, %v1468_v16, %v1466_v47  ;;  %v1976_v45 = vpop.eup %1975  ;;  %v989_v61 = vmul.f32 2.0, %v2594_v17  ;;  %vm1472_vm8 = vcmp.eq.f32.partialorder %v2779_v25, inf  ;;  %vm1474_vm9 = vcmp.eq.f32.partialorder %v2779_v25, 0.0 }
 0x15c   :  { %v1689_v63 = vsel %vm1177_vm1, %v1469_v29, 0.0  ;;  %v1247_v16 = vmul.f32 %v1976_v45, %v2756_v44  ;;  %v1475_v0 = vand.u32 2147483648, %v2779_v25  ;;  %1983 = vrsqrt.f32 %v2843_v54 }
 0x15d   :  { %v2845_v20 = vpop.f32.mrb[26].mxu0  ;;  %v2847_v32 = vpop.f32.mrb[26].mxu1  ;;  %1753 = vst [vmem:[#allocation5 + $0x128] sm:$0xff] %v1689_v63  ;;  %vm1147_vm10 = vcmp.gt.f32.partialorder %v2808_v57, 0.0  ;;  %vm1255_vm11 = vcmp.eq.f32.partialorder %v2808_v57, inf  ;;  %v2866_v31 = vmax.f32 %v1052_v37, 0.0  ;;  %v1021_v17 = vsub.f32 %v2468_v48, %v957_v36 }
 0x15e   :  { %v2853_v49 = vpop.f32.mrb[27].mxu0  ;;  %v2855_v47 = vpop.f32.mrb[27].mxu1  ;;  %v1249_v30 = vsel %vm1248_vm5, %v2756_v44, %v1247_v16  ;;  %v1053_v63 = vsub.f32 %v2500_v28, %v989_v61  ;;  %vm1257_vm12 = vcmp.eq.f32.partialorder %v2808_v57, 0.0  ;;  %v1258_v37 = vand.u32 2147483648, %v2808_v57 }
 0x15f   :  { %3652 = vst [vmem:[#allocation40_spill] sm:$0xff] %v2853_v49  ;;  %3653 = vst [vmem:[#allocation41_spill] sm:$0xff] %v2855_v47  ;;  %v1978_v29 = vpop.eup %1977  ;;  %v1252_v14 = vsel %vm1250_vm6, %v1251_v26, %v1249_v30  ;;  %1985 = vrsqrt.f32 %v2866_v31  ;;  %vm1179_vm13 = vcmp.gt.f32.partialorder %v2810_v11, 0.0  ;;  %vm1479_vm14 = vcmp.eq.f32.partialorder %v2810_v11, inf }
 0x160   :  { %v1471_v45 = vmul.f32 %v1978_v29, %v2779_v25  ;;  %v1658_v16 = vsel %vm1146_vm4, %v1252_v14, 0.0  ;;  %v2891_v44 = vmax.f32 %v1021_v17, 0.0  ;;  %v1980_v36 = vpop.eup %1979  ;;  %vm1481_vm15 = vcmp.eq.f32.partialorder %v2810_v11, 0.0 }
 0x161   :  { %v2873_v47 = vpop.f32.mrb[28].mxu0  ;;  %v2875_v49 = vpop.f32.mrb[28].mxu1  ;;  %1722 = vst [vmem:[#allocation5 + $0x30] sm:$0xff] %v1658_v16  ;;  %v2896_v29 = vmax.f32 %v1053_v63, 0.0  ;;  %v958_v30 = vmul.f32 2.0, %v2607_v15  ;;  %vm1148_vm0 = vcmp.gt.f32.partialorder %v2843_v54, 0.0 }
 0x162   :  { %v2882_v48 = vpop.f32.mrb[29].mxu0  ;;  %v2884_v26 = vpop.f32.mrb[29].mxu1  ;;  %v1473_v28 = vsel %vm1472_vm8, %v2779_v25, %v1471_v45  ;;  %v1254_v45 = vmul.f32 %v1980_v36, %v2808_v57  ;;  %1987 = vrsqrt.f32 %v2891_v44  ;;  %vm1262_vm1 = vcmp.eq.f32.partialorder %v2843_v54, inf }
 0x163   :  { %3654 = vst [vmem:[#allocation42_spill] sm:$0xff] %v2884_v26  ;;  %v1476_v61 = vsel %vm1474_vm9, %v1475_v0, %v1473_v28  ;;  %v1982_v26 = vpop.eup %1981  ;;  %v1482_v0 = vand.u32 2147483648, %v2810_v11  ;;  %vm1264_vm2 = vcmp.eq.f32.partialorder %v2843_v54, 0.0  ;;  %v1265_v63 = vand.u32 2147483648, %v2843_v54 }
 0x164   :  { %v1690_v14 = vsel %vm1178_vm7, %v1476_v61, 0.0  ;;  %v1256_v15 = vsel %vm1255_vm11, %v2808_v57, %v1254_v45  ;;  %v1478_v25 = vmul.f32 %v1982_v26, %v2810_v11  ;;  %1989 = vrsqrt.f32 %v2896_v29 }
 0x165   :  { %v2903_v16 = vpop.f32.mrb[30].mxu0  ;;  %v2905_v17 = vpop.f32.mrb[30].mxu1  ;;  %1754 = vst [vmem:[#allocation5 + $0x130] sm:$0xff] %v1690_v14  ;;  %v1259_v28 = vsel %vm1257_vm12, %v1258_v37, %v1256_v15  ;;  %vm1180_vm3 = vcmp.gt.f32.partialorder %v2866_v31, 0.0  ;;  %vm1486_vm4 = vcmp.eq.f32.partialorder %v2866_v31, inf  ;;  %v1022_v36 = vsub.f32 %v2462_v46, %v958_v30 }
 0x166   :  { %3655 = vst [vmem:[#allocation43_spill] sm:$0xff] %v2903_v16  ;;  %3656 = vst [vmem:[#allocation44_spill] sm:$0xff] %v2905_v17  ;;  %v1984_v61 = vpop.eup %1983  ;;  %v1659_v14 = vsel %vm1147_vm10, %v1259_v28, 0.0  ;;  %v1480_v26 = vsel %vm1479_vm14, %v2810_v11, %v1478_v25  ;;  %v990_v45 = vmul.f32 2.0, %v2609_v51  ;;  %v2928_v17 = vpop.f32.mrb[31].mxu0  ;;  %v959_v30 = vmul.f32 2.0, %v2614_v22 }
 0x167   :  { %1723 = vst [vmem:[#allocation5 + $0x38] sm:$0xff] %v1659_v14  ;;  %v1483_v37 = vsel %vm1481_vm15, %v1482_v0, %v1480_v26  ;;  %v1261_v15 = vmul.f32 %v1984_v61, %v2843_v54  ;;  %v2933_v16 = vmax.f32 %v1022_v36, 0.0  ;;  %vm1488_vm5 = vcmp.eq.f32.partialorder %v2866_v31, 0.0  ;;  %v2956_v14 = vpop.f32.mrb[31].mxu1 }
 0x168   :  { %v1691_v46 = vsel %vm1179_vm13, %v1483_v37, 0.0  ;;  %v1054_v57 = vsub.f32 %v2491_v12, %v990_v45  ;;  %v1489_v0 = vand.u32 2147483648, %v2866_v31  ;;  %vm1149_vm6 = vcmp.gt.f32.partialorder %v2891_v44, 0.0 }
 0x169   :  { %v1986_v25 = vpop.eup %1985  ;;  %1755 = vst [vmem:[#allocation5 + $0x138] sm:$0xff] %v1691_v46  ;;  %v1263_v51 = vsel %vm1262_vm1, %v2843_v54, %v1261_v15  ;;  %1991 = vrsqrt.f32 %v2933_v16  ;;  %vm1269_vm7 = vcmp.eq.f32.partialorder %v2891_v44, inf  ;;  %v1023_v36 = vsub.f32 %v2379_v62, %v959_v30 }
 0x16a   :  { %v1266_v11 = vsel %vm1264_vm2, %v1265_v63, %v1263_v51  ;;  %v1485_v28 = vmul.f32 %v1986_v25, %v2866_v31  ;;  %v2952_v12 = vmax.f32 %v1054_v57, 0.0  ;;  %v991_v61 = vmul.f32 2.0, %v2616_v21 }
 0x16b   :  { %v1660_v22 = vsel %vm1148_vm0, %v1266_v11, 0.0  ;;  %v960_v45 = vmul.f32 2.0, %v2642_v41  ;;  %vm1271_vm8 = vcmp.eq.f32.partialorder %v2891_v44, 0.0  ;;  %v1272_v15 = vand.u32 2147483648, %v2891_v44 }
 0x16c   :  { %v1988_v26 = vpop.eup %1987  ;;  %1724 = vst [vmem:[#allocation5 + $0x40] sm:$0xff] %v1660_v22  ;;  %v1487_v63 = vsel %vm1486_vm4, %v2866_v31, %v1485_v28  ;;  %1993 = vrsqrt.f32 %v2952_v12  ;;  %vm1493_vm9 = vcmp.eq.f32.partialorder %v2896_v29, inf  ;;  %v1496_v46 = vand.u32 2147483648, %v2896_v29 }
 0x16d   :  { %v1490_v54 = vsel %vm1488_vm5, %v1489_v0, %v1487_v63  ;;  %v1268_v37 = vmul.f32 %v1988_v26, %v2891_v44  ;;  %v2976_v30 = vmax.f32 %v1023_v36, 0.0  ;;  %v1055_v25 = vsub.f32 %v2494_v19, %v991_v61 }
 0x16e   :  { %v1990_v62 = vpop.eup %1989  ;;  %v1692_v21 = vsel %vm1180_vm3, %v1490_v54, 0.0  ;;  %v1024_v31 = vsub.f32 %v2388_v3, %v960_v45  ;;  %v992_v0 = vmul.f32 2.0, %v2644_v5  ;;  %v961_v11 = vmul.f32 2.0, %v2652_v10 }
 0x16f   :  { %1756 = vst [vmem:[#allocation5 + $0x140] sm:$0xff] %v1692_v21  ;;  %v1270_v41 = vsel %vm1269_vm7, %v2891_v44, %v1268_v37  ;;  %v1492_v57 = vmul.f32 %v1990_v62, %v2896_v29  ;;  %vm1495_vm10 = vcmp.eq.f32.partialorder %v2896_v29, 0.0  ;;  %1995 = vrsqrt.f32 %v2976_v30 }
 0x170   :  { %v1273_v51 = vsel %vm1271_vm8, %v1272_v15, %v1270_v41  ;;  %v2989_v36 = vadd.f32 %v2374_v58, %v2538_v52  ;;  %vm1181_vm11 = vcmp.gt.f32.partialorder %v2896_v29, 0.0  ;;  %vm1150_vm12 = vcmp.gt.f32.partialorder %v2933_v16, 0.0 }
 0x171   :  { %v1661_v28 = vsel %vm1149_vm6, %v1273_v51, 0.0  ;;  %v1494_v22 = vsel %vm1493_vm9, %v2896_v29, %v1492_v57  ;;  %v2993_v10 = vmax.f32 %v1055_v25, 0.0  ;;  %v2995_v44 = vmax.f32 %v1024_v31, 0.0 }
 0x172   :  { %1725 = vst [vmem:[#allocation5 + $0x48] sm:$0xff] %v1661_v28  ;;  %v1497_v3 = vsel %vm1495_vm10, %v1496_v46, %v1494_v22  ;;  %v1056_v61 = vsub.f32 %v2513_v40, %v992_v0  ;;  %vm1276_vm13 = vcmp.eq.f32.partialorder %v2933_v16, inf  ;;  %vm1278_vm14 = vcmp.eq.f32.partialorder %v2933_v16, 0.0 }
 0x173   :  { %v1992_v19 = vpop.eup %1991  ;;  %v1693_v5 = vsel %vm1181_vm11, %v1497_v3, 0.0  ;;  %v1025_v52 = vsub.f32 %v2391_v4, %v961_v11  ;;  %v1279_v29 = vand.u32 2147483648, %v2933_v16  ;;  %1997 = vrsqrt.f32 %v2993_v10 }
 0x174   :  { %1757 = vst [vmem:[#allocation5 + $0x148] sm:$0xff] %v1693_v5  ;;  %v1275_v26 = vmul.f32 %v1992_v19, %v2933_v16  ;;  %vm1182_vm15 = vcmp.gt.f32.partialorder %v2952_v12, 0.0  ;;  %vm1500_vm0 = vcmp.eq.f32.partialorder %v2952_v12, inf  ;;  %1999 = vrsqrt.f32 %v2995_v44 }
 0x175   :  { %vm1502_vm1 = vcmp.eq.f32.partialorder %v2952_v12, 0.0  ;;  %v1503_v54 = vand.u32 2147483648, %v2952_v12  ;;  %vm1151_vm2 = vcmp.gt.f32.partialorder %v2976_v30, 0.0  ;;  %v3014_v62 = vmax.f32 %v1056_v61, 0.0 }
 0x176   :  { %v1277_v63 = vsel %vm1276_vm13, %v2933_v16, %v1275_v26  ;;  %v1994_v40 = vpop.eup %1993  ;;  %v3016_v21 = vmax.f32 %v1025_v52, 0.0  ;;  %vm1283_vm3 = vcmp.eq.f32.partialorder %v2976_v30, inf  ;;  %vm1285_vm4 = vcmp.eq.f32.partialorder %v2976_v30, 0.0 }
 0x177   :  { %v1280_v45 = vsel %vm1278_vm14, %v1279_v29, %v1277_v63  ;;  %v1499_v37 = vmul.f32 %v1994_v40, %v2952_v12  ;;  %v993_v15 = vmul.f32 2.0, %v2654_v13  ;;  %v962_v46 = vmul.f32 2.0, %v2675_v60 }
 0x178   :  { %v1662_v4 = vsel %vm1150_vm12, %v1280_v45, 0.0  ;;  %2001 = vrsqrt.f32 %v3014_v62  ;;  %v1286_v25 = vand.u32 2147483648, %v2976_v30  ;;  %vm1183_vm5 = vcmp.gt.f32.partialorder %v2993_v10, 0.0 }
 0x179   :  { %1726 = vst [vmem:[#allocation5 + $0x50] sm:$0xff] %v1662_v4  ;;  %v1501_v16 = vsel %vm1500_vm0, %v2952_v12, %v1499_v37  ;;  %v1996_v41 = vpop.eup %1995  ;;  %vm1507_vm6 = vcmp.eq.f32.partialorder %v2993_v10, inf  ;;  %vm1509_vm7 = vcmp.eq.f32.partialorder %v2993_v10, 0.0  ;;  %2003 = vrsqrt.f32 %v3016_v21 }
 0x17a   :  { %v1504_v57 = vsel %vm1502_vm1, %v1503_v54, %v1501_v16  ;;  %v1282_v13 = vmul.f32 %v1996_v41, %v2976_v30  ;;  %v1510_v60 = vand.u32 2147483648, %v2993_v10  ;;  %vm1152_vm8 = vcmp.gt.f32.partialorder %v2995_v44, 0.0 }
 0x17b   :  { %v1694_v51 = vsel %vm1182_vm15, %v1504_v57, 0.0  ;;  %v1057_v31 = vsub.f32 %v2520_v34, %v993_v15  ;;  %v1026_v0 = vsub.f32 %v2382_v1, %v962_v46  ;;  %vm1290_vm9 = vcmp.eq.f32.partialorder %v2995_v44, inf }
 0x17c   :  { %1758 = vst [vmem:[#allocation5 + $0x150] sm:$0xff] %v1694_v51  ;;  %v1284_v12 = vsel %vm1283_vm3, %v2976_v30, %v1282_v13  ;;  %v994_v11 = vmul.f32 2.0, %v2677_v38  ;;  %v963_v28 = vmul.f32 2.0, %v2684_v39  ;;  %vm1292_vm10 = vcmp.eq.f32.partialorder %v2995_v44, 0.0 }
 0x17d   :  { %v1998_v22 = vpop.eup %1997  ;;  %v1287_v3 = vsel %vm1285_vm4, %v1286_v25, %v1284_v12  ;;  %v3047_v19 = vmax.f32 %v1057_v31, 0.0  ;;  %v3049_v34 = vmax.f32 %v1026_v0, 0.0  ;;  %v1293_v52 = vand.u32 2147483648, %v2995_v44  ;;  %v3657_v0 = vld [vmem:[#allocation11_spill] sm:$0xff] }
 0x17e   :  { %v2000_v1 = vpop.eup %1999  ;;  %v1663_v5 = vsel %vm1151_vm2, %v1287_v3, 0.0  ;;  %v1506_v61 = vmul.f32 %v1998_v22, %v2993_v10  ;;  %v1058_v38 = vsub.f32 %v2507_v55, %v994_v11  ;;  %v1027_v39 = vsub.f32 %v2385_v2, %v963_v28 }
 0x17f   :  { %1727 = vst [vmem:[#allocation5 + $0x58] sm:$0xff] %v1663_v5  ;;  %v1289_v26 = vmul.f32 %v2000_v1, %v2995_v44  ;;  %vm1184_vm11 = vcmp.gt.f32.partialorder %v3014_v62, 0.0  ;;  %2005 = vrsqrt.f32 %v3047_v19  ;;  %vm1514_vm12 = vcmp.eq.f32.partialorder %v3014_v62, inf  ;;  %v3658_v5 = vld [vmem:[#allocation27_spill] sm:$0xff] }
 0x180   :  { %v1508_v30 = vsel %vm1507_vm6, %v2993_v10, %v1506_v61  ;;  %vm1516_vm13 = vcmp.eq.f32.partialorder %v3014_v62, 0.0  ;;  %2007 = vrsqrt.f32 %v3049_v34  ;;  %v1517_v45 = vand.u32 2147483648, %v3014_v62 }
 0x181   :  { %v1511_v55 = vsel %vm1509_vm7, %v1510_v60, %v1508_v30  ;;  %v1291_v2 = vsel %vm1290_vm9, %v2995_v44, %v1289_v26  ;;  %vm1153_vm14 = vcmp.gt.f32.partialorder %v3016_v21, 0.0  ;;  %v3080_v37 = vmax.f32 %v1058_v38, 0.0 }
 0x182   :  { %v2002_v29 = vpop.eup %2001  ;;  %v1695_v63 = vsel %vm1183_vm5, %v1511_v55, 0.0  ;;  %v1294_v40 = vsel %vm1292_vm10, %v1293_v52, %v1291_v2  ;;  %v3082_v15 = vmax.f32 %v1027_v39, 0.0  ;;  %vm1297_vm15 = vcmp.eq.f32.partialorder %v3016_v21, inf  ;;  %v3659_v39 = vld [vmem:[#allocation12_spill] sm:$0xff] }
 0x183   :  { %1759 = vst [vmem:[#allocation5 + $0x158] sm:$0xff] %v1695_v63  ;;  %v1664_v54 = vsel %vm1152_vm8, %v1294_v40, 0.0  ;;  %v1513_v4 = vmul.f32 %v2002_v29, %v3014_v62  ;;  %v2004_v46 = vpop.eup %2003  ;;  %vm1299_vm0 = vcmp.eq.f32.partialorder %v3016_v21, 0.0  ;;  %v995_v10 = vmul.f32 2.0, %v2686_v6 }
 0x184   :  { %1728 = vst [vmem:[#allocation5 + $0x60] sm:$0xff] %v1664_v54  ;;  %v964_v16 = vmul.f32 2.0, %v2705_v27  ;;  %v1296_v41 = vmul.f32 %v2004_v46, %v3016_v21  ;;  %2009 = vrsqrt.f32 %v3080_v37  ;;  %v1300_v25 = vand.u32 2147483648, %v3016_v21 }
 0x185   :  { %v1515_v44 = vsel %vm1514_vm12, %v3014_v62, %v1513_v4  ;;  %vm1185_vm1 = vcmp.gt.f32.partialorder %v3047_v19, 0.0  ;;  %vm1521_vm2 = vcmp.eq.f32.partialorder %v3047_v19, inf  ;;  %2011 = vrsqrt.f32 %v3082_v15  ;;  %v3660_v4 = vld [vmem:[#allocation28_spill] sm:$0xff] }
 0x186   :  { %v1518_v57 = vsel %vm1516_vm13, %v1517_v45, %v1515_v44  ;;  %v1298_v27 = vsel %vm1297_vm15, %v3016_v21, %v1296_v41  ;;  %vm1523_vm3 = vcmp.eq.f32.partialorder %v3047_v19, 0.0  ;;  %v1524_v13 = vand.u32 2147483648, %v3047_v19 }
 0x187   :  { %v1696_v6 = vsel %vm1184_vm11, %v1518_v57, 0.0  ;;  %v1301_v51 = vsel %vm1299_vm0, %v1300_v25, %v1298_v27  ;;  %vm1154_vm4 = vcmp.gt.f32.partialorder %v3049_v34, 0.0  ;;  %v1059_v62 = vsub.f32 %v2510_v56, %v995_v10 }
 0x188   :  { %1760 = vst [vmem:[#allocation5 + $0x160] sm:$0xff] %v1696_v6  ;;  %v1665_v31 = vsel %vm1153_vm14, %v1301_v51, 0.0  ;;  %v1028_v12 = vsub.f32 %v3657_v0, %v964_v16  ;;  %v996_v11 = vmul.f32 2.0, %v2707_v18  ;;  %vm1304_vm5 = vcmp.eq.f32.partialorder %v3049_v34, inf  ;;  %v3663_v0 = vld [vmem:[#allocation34_spill] sm:$0xff] }
 0x189   :  { %v2006_v60 = vpop.eup %2005  ;;  %1729 = vst [vmem:[#allocation5 + $0x68] sm:$0xff] %v1665_v31  ;;  %v965_v22 = vmul.f32 2.0, %v2716_v35  ;;  %vm1306_vm6 = vcmp.eq.f32.partialorder %v3049_v34, 0.0  ;;  %v3114_v1 = vmax.f32 %v1059_v62, 0.0  ;;  %v1307_v38 = vand.u32 2147483648, %v3049_v34  ;;  %v3662_v31 = vld [vmem:[#allocation25_spill] sm:$0xff] }
 0x18a   :  { %v1520_v28 = vmul.f32 %v2006_v60, %v3047_v19  ;;  %v2008_v3 = vpop.eup %2007  ;;  %v3116_v21 = vmax.f32 %v1028_v12, 0.0  ;;  %v1060_v56 = vsub.f32 %v3658_v5, %v996_v11  ;;  %vm1186_vm7 = vcmp.gt.f32.partialorder %v3080_v37, 0.0 }
 0x18b   :  { %v1303_v61 = vmul.f32 %v2008_v3, %v3049_v34  ;;  %v1029_v26 = vsub.f32 %v3659_v39, %v965_v22  ;;  %2013 = vrsqrt.f32 %v3114_v1  ;;  %v997_v52 = vmul.f32 2.0, %v2718_v33  ;;  %v3665_v39 = vld [vmem:[#allocation35_spill] sm:$0xff] }
 0x18c   :  { %v1522_v18 = vsel %vm1521_vm2, %v3047_v19, %v1520_v28  ;;  %vm1528_vm8 = vcmp.eq.f32.partialorder %v3080_v37, inf  ;;  %vm1530_vm9 = vcmp.eq.f32.partialorder %v3080_v37, 0.0  ;;  %2015 = vrsqrt.f32 %v3116_v21 }
 0x18d   :  { %v1525_v35 = vsel %vm1523_vm3, %v1524_v13, %v1522_v18  ;;  %v1305_v55 = vsel %vm1304_vm5, %v3049_v34, %v1303_v61  ;;  %v1531_v63 = vand.u32 2147483648, %v3080_v37  ;;  %vm1155_vm10 = vcmp.gt.f32.partialorder %v3082_v15, 0.0  ;;  %v3661_v13 = vld [vmem:[#allocation9_spill] sm:$0xff]  ;;  %v3664_v18 = vld [vmem:[#allocation10_spill] sm:$0xff] }
 0x18e   :  { %v1697_v30 = vsel %vm1185_vm1, %v1525_v35, 0.0  ;;  %v2010_v2 = vpop.eup %2009  ;;  %v1308_v29 = vsel %vm1306_vm6, %v1307_v38, %v1305_v55  ;;  %vm1311_vm11 = vcmp.eq.f32.partialorder %v3082_v15, inf  ;;  %v3146_v45 = vmax.f32 %v1060_v56, 0.0 }
 0x18f   :  { %1761 = vst [vmem:[#allocation5 + $0x168] sm:$0xff] %v1697_v30  ;;  %v1666_v33 = vsel %vm1154_vm4, %v1308_v29, 0.0  ;;  %v1527_v19 = vmul.f32 %v2010_v2, %v3080_v37  ;;  %v2012_v40 = vpop.eup %2011  ;;  %v3148_v54 = vmax.f32 %v1029_v26, 0.0  ;;  %v1061_v46 = vsub.f32 %v3660_v4, %v997_v52 }
 0x190   :  { %1730 = vst [vmem:[#allocation5 + $0x70] sm:$0xff] %v1666_v33  ;;  %v1310_v10 = vmul.f32 %v2012_v40, %v3082_v15  ;;  %v1314_v16 = vand.u32 2147483648, %v3082_v15  ;;  %v966_v44 = vmul.f32 2.0, %v2736_v53  ;;  %2017 = vrsqrt.f32 %v3146_v45  ;;  %v3666_v40 = vld [vmem:[#allocation26_spill] sm:$0xff] }
 0x191   :  { %v1529_v34 = vsel %vm1528_vm8, %v3080_v37, %v1527_v19  ;;  %v998_v57 = vmul.f32 2.0, %v2738_v24  ;;  %vm1313_vm12 = vcmp.eq.f32.partialorder %v3082_v15, 0.0  ;;  %vm1187_vm13 = vcmp.gt.f32.partialorder %v3114_v1, 0.0 }
 0x192   :  { %v1532_v41 = vsel %vm1530_vm9, %v1531_v63, %v1529_v34  ;;  %v1312_v6 = vsel %vm1311_vm11, %v3082_v15, %v1310_v10  ;;  %vm1535_vm14 = vcmp.eq.f32.partialorder %v3114_v1, inf  ;;  %vm1537_vm15 = vcmp.eq.f32.partialorder %v3114_v1, 0.0 }
 0x193   :  { %v1698_v25 = vsel %vm1186_vm7, %v1532_v41, 0.0  ;;  %v1315_v27 = vsel %vm1313_vm12, %v1314_v16, %v1312_v6  ;;  %2019 = vrsqrt.f32 %v3148_v54  ;;  %v1538_v24 = vand.u32 2147483648, %v3114_v1 }
 0x194   :  { %1762 = vst [vmem:[#allocation5 + $0x170] sm:$0xff] %v1698_v25  ;;  %v1667_v53 = vsel %vm1155_vm10, %v1315_v27, 0.0  ;;  %vm1156_vm0 = vcmp.gt.f32.partialorder %v3116_v21, 0.0  ;;  %v3173_v37 = vmax.f32 %v1061_v46, 0.0  ;;  %v1030_v60 = vsub.f32 %v3661_v13, %v966_v44  ;;  %v3667_v27 = vld [vmem:[#allocation36_spill] sm:$0xff]  ;;  %v3669_v13 = vld [vmem:[#allocation38_spill] sm:$0xff] }
 0x195   :  { %v2014_v51 = vpop.eup %2013  ;;  %1731 = vst [vmem:[#allocation5 + $0x78] sm:$0xff] %v1667_v53  ;;  %v1062_v62 = vsub.f32 %v3662_v31, %v998_v57  ;;  %v967_v12 = vmul.f32 2.0, %v3663_v0  ;;  %vm1318_vm1 = vcmp.eq.f32.partialorder %v3116_v21, inf  ;;  %vm1320_vm2 = vcmp.eq.f32.partialorder %v3116_v21, 0.0  ;;  %v3670_v31 = vld [vmem:[#allocation39_spill] sm:$0xff] }
 0x196   :  { %v1534_v11 = vmul.f32 %v2014_v51, %v3114_v1  ;;  %2021 = vrsqrt.f32 %v3173_v37  ;;  %v2016_v15 = vpop.eup %2015  ;;  %v1321_v28 = vand.u32 2147483648, %v3116_v21  ;;  %vm1188_vm3 = vcmp.gt.f32.partialorder %v3146_v45, 0.0 }
 0x197   :  { %v3184_v22 = vmax.f32 %v1030_v60, 0.0  ;;  %v3186_v3 = vmax.f32 %v1062_v62, 0.0  ;;  %v1317_v56 = vmul.f32 %v2016_v15, %v3116_v21  ;;  %vm1542_vm4 = vcmp.eq.f32.partialorder %v3146_v45, inf }
 0x198   :  { %v1536_v5 = vsel %vm1535_vm14, %v3114_v1, %v1534_v11  ;;  %v1031_v61 = vsub.f32 %v3664_v18, %v967_v12  ;;  %vm1544_vm5 = vcmp.eq.f32.partialorder %v3146_v45, 0.0  ;;  %v999_v26 = vmul.f32 2.0, %v3665_v39  ;;  %v3673_v39 = vld [vmem:[#allocation16_spill] sm:$0xff] }
 0x199   :  { %v1539_v38 = vsel %vm1537_vm15, %v1538_v24, %v1536_v5  ;;  %2023 = vrsqrt.f32 %v3184_v22  ;;  %v1319_v52 = vsel %vm1318_vm1, %v3116_v21, %v1317_v56  ;;  %v1545_v30 = vand.u32 2147483648, %v3146_v45  ;;  %v3668_v24 = vld [vmem:[#allocation37_spill] sm:$0xff]  ;;  %v3671_v56 = vld [vmem:[#allocation15_spill] sm:$0xff] }
 0x19a   :  { %v1699_v35 = vsel %vm1187_vm13, %v1539_v38, 0.0  ;;  %vm1157_vm6 = vcmp.gt.f32.partialorder %v3148_v54, 0.0  ;;  %v2018_v55 = vpop.eup %2017  ;;  %v1322_v2 = vsel %vm1320_vm2, %v1321_v28, %v1319_v52  ;;  %vm1325_vm7 = vcmp.eq.f32.partialorder %v3148_v54, inf }
 0x19b   :  { %1763 = vst [vmem:[#allocation5 + $0x178] sm:$0xff] %v1699_v35  ;;  %vm1327_vm8 = vcmp.eq.f32.partialorder %v3148_v54, 0.0  ;;  %2025 = vrsqrt.f32 %v3186_v3  ;;  %v1668_v1 = vsel %vm1156_vm0, %v1322_v2, 0.0  ;;  %v1541_v29 = vmul.f32 %v2018_v55, %v3146_v45  ;;  %v3674_v55 = vld [vmem:[#allocation32_spill] sm:$0xff] }
 0x19c   :  { %v1328_v33 = vand.u32 2147483648, %v3148_v54  ;;  %vm1189_vm9 = vcmp.gt.f32.partialorder %v3173_v37, 0.0  ;;  %1732 = vst [vmem:[#allocation5 + $0x80] sm:$0xff] %v1668_v1  ;;  %v3216_v63 = vmax.f32 %v1031_v61, 0.0  ;;  %v1063_v4 = vsub.f32 %v3666_v40, %v999_v26  ;;  %v3672_v61 = vld [vmem:[#allocation31_spill] sm:$0xff] }
 0x19d   :  { %v2020_v19 = vpop.eup %2019  ;;  %v1543_v46 = vsel %vm1542_vm4, %v3146_v45, %v1541_v29  ;;  %vm1549_vm10 = vcmp.eq.f32.partialorder %v3173_v37, inf  ;;  %vm1551_vm11 = vcmp.eq.f32.partialorder %v3173_v37, 0.0  ;;  %v1552_v41 = vand.u32 2147483648, %v3173_v37 }
 0x19e   :  { %v1324_v34 = vmul.f32 %v2020_v19, %v3148_v54  ;;  %v1546_v21 = vsel %vm1544_vm5, %v1545_v30, %v1543_v46  ;;  %2027 = vrsqrt.f32 %v3216_v63  ;;  %vm1158_vm12 = vcmp.gt.f32.partialorder %v3184_v22, 0.0 }
 0x19f   :  { %v1700_v16 = vsel %vm1188_vm3, %v1546_v21, 0.0  ;;  %v3238_v6 = vmax.f32 %v1063_v4, 0.0  ;;  %v968_v53 = vmul.f32 2.0, %v3667_v27  ;;  %v1000_v51 = vmul.f32 2.0, %v3668_v24 }
 0x1a0   :  { %v2022_v10 = vpop.eup %2021  ;;  %v1326_v44 = vsel %vm1325_vm7, %v3148_v54, %v1324_v34  ;;  %1764 = vst [vmem:[#allocation5 + $0x180] sm:$0xff] %v1700_v16  ;;  %v969_v60 = vmul.f32 2.0, %v3669_v13  ;;  %v1001_v62 = vmul.f32 2.0, %v3670_v31  ;;  %vm1332_vm13 = vcmp.eq.f32.partialorder %v3184_v22, inf  ;;  %v3675_v34 = vld [vmem:[#allocation8_spill] sm:$0xff] }
 0x1a1   :  { %v1329_v57 = vsel %vm1327_vm8, %v1328_v33, %v1326_v44  ;;  %v1548_v25 = vmul.f32 %v2022_v10, %v3173_v37  ;;  %vm1334_vm14 = vcmp.eq.f32.partialorder %v3184_v22, 0.0  ;;  %2029 = vrsqrt.f32 %v3238_v6  ;;  %v3272_v33 = vpop.permute.xlu0 %855 }
 0x1a2   :  { %v1669_v45 = vsel %vm1157_vm6, %v1329_v57, 0.0  ;;  %v1335_v15 = vand.u32 2147483648, %v3184_v22  ;;  %vm1556_vm15 = vcmp.eq.f32.partialorder %v3186_v3, inf  ;;  %v1032_v18 = vsub.f32 %v3671_v56, %v968_v53 }
 0x1a3   :  { %v2024_v0 = vpop.eup %2023  ;;  %1733 = vst [vmem:[#allocation5 + $0x88] sm:$0xff] %v1669_v45  ;;  %v1550_v12 = vsel %vm1549_vm10, %v3173_v37, %v1548_v25  ;;  %v1064_v38 = vsub.f32 %v3672_v61, %v1000_v51  ;;  %v1033_v26 = vsub.f32 %v3673_v39, %v969_v60  ;;  %v1559_v30 = vand.u32 2147483648, %v3186_v3  ;;  %v3676_v51 = vld [vmem:[#allocation13_spill] sm:$0xff] }
 0x1a4   :  { %v1553_v54 = vsel %vm1551_vm11, %v1552_v41, %v1550_v12  ;;  %v1331_v11 = vmul.f32 %v2024_v0, %v3184_v22  ;;  %v1065_v2 = vsub.f32 %v3674_v55, %v1001_v62  ;;  %v3268_v37 = vmax.f32 %v1032_v18, 0.0  ;;  %v3679_v18 = vld [vmem:[#allocation30_spill] sm:$0xff] }
 0x1a5   :  { %v2026_v28 = vpop.eup %2025  ;;  %v1701_v5 = vsel %vm1189_vm9, %v1553_v54, 0.0  ;;  %v3270_v29 = vmax.f32 %v1064_v38, 0.0  ;;  %vm1558_vm0 = vcmp.eq.f32.partialorder %v3186_v3, 0.0  ;;  %v3280_v4 = vmax.f32 %v1033_v26, 0.0 }
 0x1a6   :  { %1765 = vst [vmem:[#allocation5 + $0x188] sm:$0xff] %v1701_v5  ;;  %v1333_v35 = vsel %vm1332_vm13, %v3184_v22, %v1331_v11  ;;  %v1555_v52 = vmul.f32 %v2026_v28, %v3186_v3  ;;  %v3284_v21 = vadd.f32 %v3675_v34, %v3272_v33  ;;  %vm1190_vm1 = vcmp.gt.f32.partialorder %v3186_v3, 0.0  ;;  %v3678_v5 = vld [vmem:[#allocation14_spill] sm:$0xff] }
 0x1a7   :  { %v1336_v1 = vsel %vm1334_vm14, %v1335_v15, %v1333_v35  ;;  %2031 = vrsqrt.f32 %v3268_v37  ;;  %vm1159_vm2 = vcmp.gt.f32.partialorder %v3216_v63, 0.0  ;;  %v3290_v44 = vmax.f32 %v1065_v2, 0.0 }
 0x1a8   :  { %v1670_v19 = vsel %vm1158_vm12, %v1336_v1, 0.0  ;;  %v1557_v40 = vsel %vm1556_vm15, %v3186_v3, %v1555_v52  ;;  %v2028_v46 = vpop.eup %2027  ;;  %vm1339_vm3 = vcmp.eq.f32.partialorder %v3216_v63, inf  ;;  %v1342_v41 = vand.u32 2147483648, %v3216_v63  ;;  %v3680_v1 = vld [vmem:[#allocation19_spill] sm:$0xff] }
 0x1a9   :  { %1734 = vst [vmem:[#allocation5 + $0x90] sm:$0xff] %v1670_v19  ;;  %v1560_v10 = vsel %vm1558_vm0, %v1559_v30, %v1557_v40  ;;  %v1338_v16 = vmul.f32 %v2028_v46, %v3216_v63  ;;  %2033 = vrsqrt.f32 %v3270_v29  ;;  %v970_v57 = vmul.f32 2.0, %v2786_v9 }
 0x1aa   :  { %v1702_v22 = vsel %vm1190_vm1, %v1560_v10, 0.0  ;;  %vm1341_vm4 = vcmp.eq.f32.partialorder %v3216_v63, 0.0  ;;  %vm1191_vm5 = vcmp.gt.f32.partialorder %v3238_v6, 0.0  ;;  %2035 = vrsqrt.f32 %v3280_v4  ;;  %v3354_v10 = vpop.permute.xlu0 %865 }
 0x1ab   :  { %1766 = vst [vmem:[#allocation5 + $0x190] sm:$0xff] %v1702_v22  ;;  %v1340_v3 = vsel %vm1339_vm3, %v3216_v63, %v1338_v16  ;;  %v2030_v25 = vpop.eup %2029  ;;  %vm1563_vm6 = vcmp.eq.f32.partialorder %v3238_v6, inf  ;;  %vm1565_vm7 = vcmp.eq.f32.partialorder %v3238_v6, 0.0  ;;  %v1566_v53 = vand.u32 2147483648, %v3238_v6 }
 0x1ac   :  { %v1343_v27 = vsel %vm1341_vm4, %v1342_v41, %v1340_v3  ;;  %v1562_v9 = vmul.f32 %v2030_v25, %v3238_v6  ;;  %vm1346_vm8 = vcmp.eq.f32.partialorder %v3268_v37, inf  ;;  %2037 = vrsqrt.f32 %v3290_v44 }
 0x1ad   :  { %v1671_v45 = vsel %vm1159_vm2, %v1343_v27, 0.0  ;;  %vm1160_vm9 = vcmp.gt.f32.partialorder %v3268_v37, 0.0  ;;  %vm1348_vm10 = vcmp.eq.f32.partialorder %v3268_v37, 0.0  ;;  %v1349_v24 = vand.u32 2147483648, %v3268_v37 }
 0x1ae   :  { %1735 = vst [vmem:[#allocation5 + $0x98] sm:$0xff] %v1671_v45  ;;  %vm1570_vm11 = vcmp.eq.f32.partialorder %v3270_v29, inf  ;;  %v1034_v13 = vsub.f32 %v3676_v51, %v970_v57  ;;  %v1564_v63 = vsel %vm1563_vm6, %v3238_v6, %v1562_v9  ;;  %vm1192_vm12 = vcmp.gt.f32.partialorder %v3270_v29, 0.0  ;;  %v3677_v6 = vld [vmem:[#allocation29_spill] sm:$0xff] }
 0x1af   :  { %v1567_v60 = vsel %vm1565_vm7, %v1566_v53, %v1564_v63  ;;  %vm1572_vm13 = vcmp.eq.f32.partialorder %v3270_v29, 0.0  ;;  %v1002_v0 = vmul.f32 2.0, %v2788_v50  ;;  %v971_v12 = vmul.f32 2.0, %v2796_v8 }
 0x1b0   :  { %v3316_v31 = vmax.f32 %v1034_v13, 0.0  ;;  %v1703_v62 = vsel %vm1191_vm5, %v1567_v60, 0.0  ;;  %v1003_v54 = vmul.f32 2.0, %v2798_v43  ;;  %v1573_v15 = vand.u32 2147483648, %v3270_v29 }
 0x1b1   :  { %v2032_v11 = vpop.eup %2031  ;;  %1767 = vst [vmem:[#allocation5 + $0x198] sm:$0xff] %v1703_v62  ;;  %vm1161_vm14 = vcmp.gt.f32.partialorder %v3280_v4, 0.0  ;;  %vm1353_vm15 = vcmp.eq.f32.partialorder %v3280_v4, inf  ;;  %vm1355_vm0 = vcmp.eq.f32.partialorder %v3280_v4, 0.0  ;;  %v1066_v50 = vsub.f32 %v3677_v6, %v1002_v0 }
 0x1b2   :  { %2039 = vrsqrt.f32 %v3316_v31  ;;  %v1345_v28 = vmul.f32 %v2032_v11, %v3268_v37  ;;  %v1035_v8 = vsub.f32 %v3678_v5, %v971_v12  ;;  %v1356_v43 = vand.u32 2147483648, %v3280_v4 }
 0x1b3   :  { %v2034_v56 = vpop.eup %2033  ;;  %vm1577_vm1 = vcmp.eq.f32.partialorder %v3290_v44, inf  ;;  %v1067_v61 = vsub.f32 %v3679_v18, %v1003_v54  ;;  %v972_v38 = vmul.f32 2.0, %v2817_v23  ;;  %v3339_v52 = vmax.f32 %v1066_v50, 0.0 }
 0x1b4   :  { %v2036_v39 = vpop.eup %2035  ;;  %v1347_v26 = vsel %vm1346_vm8, %v3268_v37, %v1345_v28  ;;  %v1569_v35 = vmul.f32 %v2034_v56, %v3270_v29  ;;  %v3344_v2 = vmax.f32 %v1035_v8, 0.0  ;;  %vm1579_vm2 = vcmp.eq.f32.partialorder %v3290_v44, 0.0 }
 0x1b5   :  { %v1350_v30 = vsel %vm1348_vm10, %v1349_v24, %v1347_v26  ;;  %v1352_v55 = vmul.f32 %v2036_v39, %v3280_v4  ;;  %v1036_v19 = vsub.f32 %v3680_v1, %v972_v38  ;;  %2041 = vrsqrt.f32 %v3339_v52 }
 0x1b6   :  { %v2038_v40 = vpop.eup %2037  ;;  %v1672_v23 = vsel %vm1160_vm9, %v1350_v30, 0.0  ;;  %v1571_v46 = vsel %vm1570_vm11, %v3270_v29, %v1569_v35  ;;  %v3362_v41 = vmax.f32 %v1067_v61, 0.0  ;;  %v1580_v25 = vand.u32 2147483648, %v3290_v44 }
 0x1b7   :  { %1736 = vst [vmem:[#allocation5 + $0xa0] sm:$0xff] %v1672_v23  ;;  %v1574_v22 = vsel %vm1572_vm13, %v1573_v15, %v1571_v46  ;;  %v1354_v16 = vsel %vm1353_vm15, %v3280_v4, %v1352_v55  ;;  %v1576_v37 = vmul.f32 %v2038_v40, %v3290_v44  ;;  %v1004_v27 = vmul.f32 2.0, %v2819_v42  ;;  %v3683_v46 = vld [vmem:[#allocation40_spill] sm:$0xff] }
 0x1b8   :  { %v1704_v57 = vsel %vm1192_vm12, %v1574_v22, 0.0  ;;  %v1357_v3 = vsel %vm1355_vm0, %v1356_v43, %v1354_v16  ;;  %2043 = vrsqrt.f32 %v3344_v2  ;;  %v941_v29 = vadd.f32 %v2374_v58, %v3272_v33 }
 0x1b9   :  { %1768 = vst [vmem:[#allocation5 + $0x1a0] sm:$0xff] %v1704_v57  ;;  %v1673_v53 = vsel %vm1161_vm14, %v1357_v3, 0.0  ;;  %v1578_v45 = vsel %vm1577_vm1, %v3290_v44, %v1576_v37  ;;  %v3380_v9 = vadd.f32 %v3675_v34, %v3354_v10  ;;  %vm1193_vm3 = vcmp.gt.f32.partialorder %v3290_v44, 0.0 }
 0x1ba   :  { %1737 = vst [vmem:[#allocation5 + $0xa8] sm:$0xff] %v1673_v53  ;;  %v1581_v42 = vsel %vm1579_vm2, %v1580_v25, %v1578_v45  ;;  %vm1162_vm4 = vcmp.gt.f32.partialorder %v3316_v31, 0.0  ;;  %vm1360_vm5 = vcmp.eq.f32.partialorder %v3316_v31, inf  ;;  %2045 = vrsqrt.f32 %v3362_v41  ;;  %v3684_v53 = vld [vmem:[#allocation33_spill] sm:$0xff] }
 0x1bb   :  { %v1705_v24 = vsel %vm1193_vm3, %v1581_v42, 0.0  ;;  %vm1362_vm6 = vcmp.eq.f32.partialorder %v3316_v31, 0.0  ;;  %v1363_v51 = vand.u32 2147483648, %v3316_v31  ;;  %v3391_v13 = vmax.f32 %v1036_v19, 0.0 }
 0x1bc   :  { %v2040_v4 = vpop.eup %2039  ;;  %1769 = vst [vmem:[#allocation5 + $0x1a8] sm:$0xff] %v1705_v24  ;;  %v1068_v44 = vsub.f32 %v3284_v21, %v1004_v27  ;;  %v973_v63 = vmul.f32 2.0, %v2825_v7  ;;  %vm1194_vm7 = vcmp.gt.f32.partialorder %v3339_v52, 0.0  ;;  %vm1584_vm8 = vcmp.eq.f32.partialorder %v3339_v52, inf  ;;  %v3681_v7 = vld [vmem:[#allocation20_spill] sm:$0xff]  ;;  %v3686_v24 = vld [vmem:[#allocation41_spill] sm:$0xff] }
 0x1bd   :  { %v1359_v33 = vmul.f32 %v2040_v4, %v3316_v31  ;;  %2047 = vrsqrt.f32 %v3391_v13  ;;  %vm1586_vm9 = vcmp.eq.f32.partialorder %v3339_v52, 0.0  ;;  %v1587_v0 = vand.u32 2147483648, %v3339_v52 }
 0x1be   :  { %v3401_v12 = vmax.f32 %v1068_v44, 0.0  ;;  %v1037_v11 = vsub.f32 %v3681_v7, %v973_v63  ;;  %v1005_v15 = vmul.f32 2.0, %v2827_v59  ;;  %v974_v28 = vmul.f32 2.0, %v2845_v20  ;;  %v3682_v20 = vld [vmem:[#allocation17_spill] sm:$0xff] }
 0x1bf   :  { %v1361_v60 = vsel %vm1360_vm5, %v3316_v31, %v1359_v33  ;;  %v2042_v54 = vpop.eup %2041  ;;  %vm1163_vm10 = vcmp.gt.f32.partialorder %v3344_v2, 0.0  ;;  %vm1367_vm11 = vcmp.eq.f32.partialorder %v3344_v2, inf  ;;  %vm1369_vm12 = vcmp.eq.f32.partialorder %v3344_v2, 0.0 }
 0x1c0   :  { %v1364_v62 = vsel %vm1362_vm6, %v1363_v51, %v1361_v60  ;;  %v1583_v6 = vmul.f32 %v2042_v54, %v3339_v52  ;;  %2049 = vrsqrt.f32 %v3401_v12  ;;  %v1370_v31 = vand.u32 2147483648, %v3344_v2 }
 0x1c1   :  { %v1674_v21 = vsel %vm1162_vm4, %v1364_v62, 0.0  ;;  %v3414_v50 = vmax.f32 %v1037_v11, 0.0  ;;  %v1069_v5 = vsub.f32 %v941_v29, %v1005_v15  ;;  %vm1195_vm13 = vcmp.gt.f32.partialorder %v3362_v41, 0.0  ;;  %v3685_v29 = vld [vmem:[#allocation18_spill] sm:$0xff] }
 0x1c2   :  { %1738 = vst [vmem:[#allocation5 + $0xb0] sm:$0xff] %v1674_v21  ;;  %v2044_v8 = vpop.eup %2043  ;;  %v1585_v59 = vsel %vm1584_vm8, %v3339_v52, %v1583_v6  ;;  %v1038_v56 = vsub.f32 %v3682_v20, %v974_v28  ;;  %vm1591_vm14 = vcmp.eq.f32.partialorder %v3362_v41, inf  ;;  %vm1593_vm15 = vcmp.eq.f32.partialorder %v3362_v41, 0.0 }
 0x1c3   :  { %v1588_v43 = vsel %vm1586_vm9, %v1587_v0, %v1585_v59  ;;  %v1366_v18 = vmul.f32 %v2044_v8, %v3344_v2  ;;  %2051 = vrsqrt.f32 %v3414_v50  ;;  %v1594_v39 = vand.u32 2147483648, %v3362_v41 }
 0x1c4   :  { %v2046_v61 = vpop.eup %2045  ;;  %v1706_v38 = vsel %vm1194_vm7, %v1588_v43, 0.0  ;;  %v3434_v30 = vmax.f32 %v1069_v5, 0.0  ;;  %v3436_v55 = vmax.f32 %v1038_v56, 0.0  ;;  %vm1164_vm0 = vcmp.gt.f32.partialorder %v3391_v13, 0.0 }
 0x1c5   :  { %1770 = vst [vmem:[#allocation5 + $0x1b0] sm:$0xff] %v1706_v38  ;;  %v1368_v26 = vsel %vm1367_vm11, %v3344_v2, %v1366_v18  ;;  %v1590_v35 = vmul.f32 %v2046_v61, %v3362_v41  ;;  %vm1374_vm1 = vcmp.eq.f32.partialorder %v3391_v13, inf  ;;  %v1006_v1 = vmul.f32 2.0, %v2847_v32  ;;  %v871_v61 = vpop.permute.xlu1 %870 }
 0x1c6   :  { %v1371_v52 = vsel %vm1369_vm12, %v1370_v31, %v1368_v26  ;;  %2053 = vrsqrt.f32 %v3434_v30  ;;  %v975_v22 = vmul.f32 2.0, %v3683_v46  ;;  %vm1376_vm2 = vcmp.eq.f32.partialorder %v3391_v13, 0.0 }
 0x1c7   :  { %v2048_v19 = vpop.eup %2047  ;;  %v1675_v40 = vsel %vm1163_vm10, %v1371_v52, 0.0  ;;  %v1592_v23 = vsel %vm1591_vm14, %v3362_v41, %v1590_v35  ;;  %v1377_v2 = vand.u32 2147483648, %v3391_v13  ;;  %vm1196_vm3 = vcmp.gt.f32.partialorder %v3401_v12, 0.0  ;;  %v3688_v35 = vld [vmem:[#allocation24_spill] sm:$0xff] }
 0x1c8   :  { %1739 = vst [vmem:[#allocation5 + $0xb8] sm:$0xff] %v1675_v40  ;;  %v1595_v16 = vsel %vm1593_vm15, %v1594_v39, %v1592_v23  ;;  %v1373_v37 = vmul.f32 %v2048_v19, %v3391_v13  ;;  %2055 = vrsqrt.f32 %v3436_v55  ;;  %vm1598_vm4 = vcmp.eq.f32.partialorder %v3401_v12, inf }
 0x1c9   :  { %v1707_v32 = vsel %vm1195_vm13, %v1595_v16, 0.0  ;;  %vm1600_vm5 = vcmp.eq.f32.partialorder %v3401_v12, 0.0  ;;  %v1601_v25 = vand.u32 2147483648, %v3401_v12  ;;  %v1070_v45 = vsub.f32 %v3684_v53, %v1006_v1  ;;  %v3689_v1 = vld [vmem:[#allocation42_spill] sm:$0xff] }
 0x1ca   :  { %v2050_v57 = vpop.eup %2049  ;;  %1771 = vst [vmem:[#allocation5 + $0x1b8] sm:$0xff] %v1707_v32  ;;  %v1375_v3 = vsel %vm1374_vm1, %v3391_v13, %v1373_v37  ;;  %v1039_v42 = vsub.f32 %v3685_v29, %v975_v22  ;;  %vm1381_vm6 = vcmp.eq.f32.partialorder %v3414_v50, inf  ;;  %v1007_v33 = vmul.f32 2.0, %v3686_v24  ;;  %v3690_v32 = vld [vmem:[#allocation43_spill] sm:$0xff] }
 0x1cb   :  { %v1378_v41 = vsel %vm1376_vm2, %v1377_v2, %v1375_v3  ;;  %v1597_v27 = vmul.f32 %v2050_v57, %v3401_v12  ;;  %v1384_v63 = vand.u32 2147483648, %v3414_v50  ;;  %v3472_v60 = vmax.f32 %v1070_v45, 0.0 }
 0x1cc   :  { %v1676_v4 = vsel %vm1164_vm0, %v1378_v41, 0.0  ;;  %v3474_v62 = vmax.f32 %v1039_v42, 0.0  ;;  %v1071_v13 = vsub.f32 %v2989_v36, %v1007_v33  ;;  %v976_v7 = vmul.f32 2.0, %v2873_v47  ;;  %v3692_v33 = vld [vmem:[#allocation44_spill] sm:$0xff] }
 0x1cd   :  { %v2052_v51 = vpop.eup %2051  ;;  %1740 = vst [vmem:[#allocation5 + $0xc0] sm:$0xff] %v1676_v4  ;;  %v1599_v44 = vsel %vm1598_vm4, %v3401_v12, %v1597_v27  ;;  %2057 = vrsqrt.f32 %v3472_v60  ;;  %vm1165_vm7 = vcmp.gt.f32.partialorder %v3414_v50, 0.0  ;;  %vm1383_vm8 = vcmp.eq.f32.partialorder %v3414_v50, 0.0  ;;  %v3691_v4 = vld [vmem:[#allocation21_spill] sm:$0xff] }
 0x1ce   :  { %v1602_v0 = vsel %vm1600_vm5, %v1601_v25, %v1599_v44  ;;  %v1380_v54 = vmul.f32 %v2052_v51, %v3414_v50  ;;  %vm1197_vm9 = vcmp.gt.f32.partialorder %v3434_v30, 0.0  ;;  %vm1605_vm10 = vcmp.eq.f32.partialorder %v3434_v30, inf }
 0x1cf   :  { %v1708_v21 = vsel %vm1196_vm3, %v1602_v0, 0.0  ;;  %vm1607_vm11 = vcmp.eq.f32.partialorder %v3434_v30, 0.0  ;;  %2059 = vrsqrt.f32 %v3474_v62  ;;  %v1608_v28 = vand.u32 2147483648, %v3434_v30 }
 0x1d0   :  { %1772 = vst [vmem:[#allocation5 + $0x1c0] sm:$0xff] %v1708_v21  ;;  %v1382_v11 = vsel %vm1381_vm6, %v3414_v50, %v1380_v54  ;;  %v2054_v15 = vpop.eup %2053  ;;  %v3493_v6 = vmax.f32 %v1071_v13, 0.0  ;;  %v3687_v50 = vld [vmem:[#allocation23_spill] sm:$0xff]  ;;  %v1008_v8 = vmul.f32 2.0, %v2875_v49  ;;  %v977_v59 = vmul.f32 2.0, %v2882_v48 }
 0x1d1   :  { %v1385_v36 = vsel %vm1383_vm8, %v1384_v63, %v1382_v11  ;;  %v1604_v12 = vmul.f32 %v2054_v15, %v3434_v30  ;;  %v1040_v5 = vsub.f32 %v3687_v50, %v976_v7  ;;  %vm1166_vm12 = vcmp.gt.f32.partialorder %v3436_v55, 0.0 }
 0x1d2   :  { %v1677_v47 = vsel %vm1165_vm7, %v1385_v36, 0.0  ;;  %v2056_v31 = vpop.eup %2055  ;;  %2061 = vrsqrt.f32 %v3493_v6  ;;  %vm1388_vm13 = vcmp.eq.f32.partialorder %v3436_v55, inf  ;;  %vm1390_vm14 = vcmp.eq.f32.partialorder %v3436_v55, 0.0 }
 0x1d3   :  { %1741 = vst [vmem:[#allocation5 + $0xc8] sm:$0xff] %v1677_v47  ;;  %v1606_v20 = vsel %vm1605_vm10, %v3434_v30, %v1604_v12  ;;  %v1387_v56 = vmul.f32 %v2056_v31, %v3436_v55  ;;  %v1391_v18 = vand.u32 2147483648, %v3436_v55  ;;  %v3508_v38 = vmax.f32 %v1040_v5, 0.0 }
 0x1d4   :  { %v1609_v43 = vsel %vm1607_vm11, %v1608_v28, %v1606_v20  ;;  %v1072_v39 = vsub.f32 %v3380_v9, %v1008_v8  ;;  %v1041_v52 = vsub.f32 %v3688_v35, %v977_v59  ;;  %v1009_v19 = vmul.f32 2.0, %v3689_v1  ;;  %v3693_v59 = vld [vmem:[#allocation22_spill] sm:$0xff] }
 0x1d5   :  { %v1709_v49 = vsel %vm1197_vm9, %v1609_v43, 0.0  ;;  %v1389_v48 = vsel %vm1388_vm13, %v3436_v55, %v1387_v56  ;;  %v945_v40 = vadd.f32 %v2374_v58, %v3354_v10  ;;  %2063 = vrsqrt.f32 %v3508_v38 }
 0x1d6   :  { %1773 = vst [vmem:[#allocation5 + $0x1c8] sm:$0xff] %v1709_v49  ;;  %v1392_v26 = vsel %vm1390_vm14, %v1391_v18, %v1389_v48  ;;  %v946_v46 = vadd.f32 %v3675_v34, %v871_v61  ;;  %v3519_v22 = vmax.f32 %v1072_v39, 0.0  ;;  %v3521_v9 = vmax.f32 %v1041_v52, 0.0 }
 0x1d7   :  { %v1678_v23 = vsel %vm1166_vm12, %v1392_v26, 0.0  ;;  %v2058_v30 = vpop.eup %2057  ;;  %vm1198_vm15 = vcmp.gt.f32.partialorder %v3472_v60, 0.0  ;;  %vm1612_vm0 = vcmp.eq.f32.partialorder %v3472_v60, inf  ;;  %v1073_v10 = vsub.f32 %v945_v40, %v1009_v19 }
 0x1d8   :  { %1742 = vst [vmem:[#allocation5 + $0xd0] sm:$0xff] %v1678_v23  ;;  %v1611_v16 = vmul.f32 %v2058_v30, %v3472_v60  ;;  %v1615_v55 = vand.u32 2147483648, %v3472_v60  ;;  %2065 = vrsqrt.f32 %v3519_v22  ;;  %v978_v2 = vmul.f32 2.0, %v3690_v32 }
 0x1d9   :  { %v2060_v37 = vpop.eup %2059  ;;  %vm1614_vm1 = vcmp.eq.f32.partialorder %v3472_v60, 0.0  ;;  %vm1167_vm2 = vcmp.gt.f32.partialorder %v3474_v62, 0.0  ;;  %vm1395_vm3 = vcmp.eq.f32.partialorder %v3474_v62, inf  ;;  %v1398_v25 = vand.u32 2147483648, %v3474_v62 }
 0x1da   :  { %v1613_v34 = vsel %vm1612_vm0, %v3472_v60, %v1611_v16  ;;  %v1394_v57 = vmul.f32 %v2060_v37, %v3474_v62  ;;  %2067 = vrsqrt.f32 %v3521_v9  ;;  %vm1397_vm4 = vcmp.eq.f32.partialorder %v3474_v62, 0.0 }
 0x1db   :  { %v1616_v3 = vsel %vm1614_vm1, %v1615_v55, %v1613_v34  ;;  %v3540_v45 = vmax.f32 %v1073_v10, 0.0  ;;  %v1042_v24 = vsub.f32 %v3691_v4, %v978_v2  ;;  %v1010_v51 = vmul.f32 2.0, %v3692_v33 }
 0x1dc   :  { %v2062_v41 = vpop.eup %2061  ;;  %v1710_v27 = vsel %vm1198_vm15, %v1616_v3, 0.0  ;;  %v1396_v53 = vsel %vm1395_vm3, %v3474_v62, %v1394_v57  ;;  %vm1619_vm5 = vcmp.eq.f32.partialorder %v3493_v6, inf  ;;  %v1622_v63 = vand.u32 2147483648, %v3493_v6 }
 0x1dd   :  { %1774 = vst [vmem:[#allocation5 + $0x1d0] sm:$0xff] %v1710_v27  ;;  %v1399_v29 = vsel %vm1397_vm4, %v1398_v25, %v1396_v53  ;;  %v1618_v42 = vmul.f32 %v2062_v41, %v3493_v6  ;;  %2069 = vrsqrt.f32 %v3540_v45  ;;  %vm1199_vm6 = vcmp.gt.f32.partialorder %v3493_v6, 0.0 }
 0x1de   :  { %v1679_v44 = vsel %vm1167_vm2, %v1399_v29, 0.0  ;;  %vm1621_vm7 = vcmp.eq.f32.partialorder %v3493_v6, 0.0  ;;  %v3553_v0 = vmax.f32 %v1042_v24, 0.0  ;;  %v1074_v21 = vsub.f32 %v946_v46, %v1010_v51 }
 0x1df   :  { %1743 = vst [vmem:[#allocation5 + $0xd8] sm:$0xff] %v1679_v44  ;;  %v1620_v60 = vsel %vm1619_vm5, %v3493_v6, %v1618_v42  ;;  %v2064_v54 = vpop.eup %2063  ;;  %v947_v62 = vadd.f32 %v2374_v58, %v871_v61  ;;  %vm1168_vm8 = vcmp.gt.f32.partialorder %v3508_v38, 0.0  ;;  %vm1402_vm9 = vcmp.eq.f32.partialorder %v3508_v38, inf }
 0x1e0   :  { %v1623_v13 = vsel %vm1621_vm7, %v1622_v63, %v1620_v60  ;;  %v1401_v11 = vmul.f32 %v2064_v54, %v3508_v38  ;;  %2071 = vrsqrt.f32 %v3553_v0  ;;  %v1405_v15 = vand.u32 2147483648, %v3508_v38 }
 0x1e1   :  { %v1711_v7 = vsel %vm1199_vm6, %v1623_v13, 0.0  ;;  %v3561_v36 = vmax.f32 %v1074_v21, 0.0  ;;  %vm1404_vm10 = vcmp.eq.f32.partialorder %v3508_v38, 0.0  ;;  %v979_v58 = vmul.f32 2.0, %v2928_v17 }
 0x1e2   :  { %1775 = vst [vmem:[#allocation5 + $0x1d8] sm:$0xff] %v1711_v7  ;;  %v2066_v47 = vpop.eup %2065  ;;  %v1403_v12 = vsel %vm1402_vm9, %v3508_v38, %v1401_v11  ;;  %v1011_v28 = vmul.f32 2.0, %v2956_v14  ;;  %vm1200_vm11 = vcmp.gt.f32.partialorder %v3519_v22, 0.0  ;;  %vm1626_vm12 = vcmp.eq.f32.partialorder %v3519_v22, inf }
 0x1e3   :  { %v1406_v6 = vsel %vm1404_vm10, %v1405_v15, %v1403_v12  ;;  %v1625_v31 = vmul.f32 %v2066_v47, %v3519_v22  ;;  %2073 = vrsqrt.f32 %v3561_v36  ;;  %vm1628_vm13 = vcmp.eq.f32.partialorder %v3519_v22, 0.0 }
 0x1e4   :  { %v2068_v50 = vpop.eup %2067  ;;  %v1680_v5 = vsel %vm1168_vm8, %v1406_v6, 0.0  ;;  %v1629_v8 = vand.u32 2147483648, %v3519_v22  ;;  %v1043_v20 = vsub.f32 %v3693_v59, %v979_v58  ;;  %v1075_v56 = vsub.f32 %v947_v62, %v1011_v28 }
 0x1e5   :  { %1744 = vst [vmem:[#allocation5 + $0xe0] sm:$0xff] %v1680_v5  ;;  %v1627_v17 = vsel %vm1626_vm12, %v3519_v22, %v1625_v31  ;;  %v1408_v14 = vmul.f32 %v2068_v50, %v3521_v9  ;;  %vm1409_vm14 = vcmp.eq.f32.partialorder %v3521_v9, inf  ;;  %vm1411_vm15 = vcmp.eq.f32.partialorder %v3521_v9, 0.0 }
 0x1e6   :  { %v1630_v43 = vsel %vm1628_vm13, %v1629_v8, %v1627_v17  ;;  %v1412_v18 = vand.u32 2147483648, %v3521_v9  ;;  %v1107_v38 = vmax.f32 %v1043_v20, 0.0  ;;  %v1139_v39 = vmax.f32 %v1075_v56, 0.0 }
 0x1e7   :  { %v2070_v61 = vpop.eup %2069  ;;  %v1712_v49 = vsel %vm1200_vm11, %v1630_v43, 0.0  ;;  %v1410_v48 = vsel %vm1409_vm14, %v3521_v9, %v1408_v14  ;;  %vm1169_vm0 = vcmp.gt.f32.partialorder %v3521_v9, 0.0  ;;  %vm1633_vm1 = vcmp.eq.f32.partialorder %v3540_v45, inf }
 0x1e8   :  { %1776 = vst [vmem:[#allocation5 + $0x1e0] sm:$0xff] %v1712_v49  ;;  %v1413_v26 = vsel %vm1411_vm15, %v1412_v18, %v1410_v48  ;;  %v1632_v35 = vmul.f32 %v2070_v61, %v3540_v45  ;;  %v1636_v1 = vand.u32 2147483648, %v3540_v45  ;;  %2075 = vrsqrt.f32 %v1107_v38 }
 0x1e9   :  { %v1681_v52 = vsel %vm1169_vm0, %v1413_v26, 0.0  ;;  %vm1635_vm2 = vcmp.eq.f32.partialorder %v3540_v45, 0.0  ;;  %vm1201_vm3 = vcmp.gt.f32.partialorder %v3540_v45, 0.0  ;;  %2077 = vrsqrt.f32 %v1139_v39 }
 0x1ea   :  { %v2072_v19 = vpop.eup %2071  ;;  %1745 = vst [vmem:[#allocation5 + $0xe8] sm:$0xff] %v1681_v52  ;;  %v1634_v40 = vsel %vm1633_vm1, %v3540_v45, %v1632_v35  ;;  %vm1416_vm4 = vcmp.eq.f32.partialorder %v3553_v0, inf  ;;  %v1419_v22 = vand.u32 2147483648, %v3553_v0  ;;  %vm1418_vm5 = vcmp.eq.f32.partialorder %v3553_v0, 0.0 }
 0x1eb   :  { %v1637_v23 = vsel %vm1635_vm2, %v1636_v1, %v1634_v40  ;;  %v1415_v30 = vmul.f32 %v2072_v19, %v3553_v0  ;;  %vm1170_vm6 = vcmp.gt.f32.partialorder %v3553_v0, 0.0  ;;  %vm1640_vm7 = vcmp.eq.f32.partialorder %v3561_v36, inf }
 0x1ec   :  { %v1713_v46 = vsel %vm1201_vm3, %v1637_v23, 0.0  ;;  %v1643_v32 = vand.u32 2147483648, %v3561_v36  ;;  %vm1642_vm8 = vcmp.eq.f32.partialorder %v3561_v36, 0.0  ;;  %vm1202_vm9 = vcmp.gt.f32.partialorder %v3561_v36, 0.0 }
 0x1ed   :  { %v2074_v9 = vpop.eup %2073  ;;  %1777 = vst [vmem:[#allocation5 + $0x1e8] sm:$0xff] %v1713_v46  ;;  %v1417_v16 = vsel %vm1416_vm4, %v3553_v0, %v1415_v30  ;;  %vm1423_vm10 = vcmp.eq.f32.partialorder %v1107_v38, inf  ;;  %v1426_v27 = vand.u32 2147483648, %v1107_v38  ;;  %vm1425_vm11 = vcmp.eq.f32.partialorder %v1107_v38, 0.0 }
 0x1ee   :  { %v1420_v10 = vsel %vm1418_vm5, %v1419_v22, %v1417_v16  ;;  %v1639_v37 = vmul.f32 %v2074_v9, %v3561_v36  ;;  %vm1171_vm12 = vcmp.gt.f32.partialorder %v1107_v38, 0.0  ;;  %vm1647_vm13 = vcmp.eq.f32.partialorder %v1139_v39, inf }
 0x1ef   :  { %v1682_v55 = vsel %vm1170_vm6, %v1420_v10, 0.0  ;;  %v1650_v42 = vand.u32 2147483648, %v1139_v39  ;;  %vm1649_vm14 = vcmp.eq.f32.partialorder %v1139_v39, 0.0  ;;  %vm1203_vm15 = vcmp.gt.f32.partialorder %v1139_v39, 0.0 }
 0x1f0   :  { %1746 = vst [vmem:[#allocation5 + $0xf0] sm:$0xff] %v1682_v55  ;;  %v1641_v2 = vsel %vm1640_vm7, %v3561_v36, %v1639_v37 }
 0x1f1   :  { %v1644_v34 = vsel %vm1642_vm8, %v1643_v32, %v1641_v2 }
 0x1f2   :  { %v1714_v57 = vsel %vm1202_vm9, %v1644_v34, 0.0  ;;  %v2076_v3 = vpop.eup %2075 }
 0x1f3   :  { %1778 = vst [vmem:[#allocation5 + $0x1f0] sm:$0xff] %v1714_v57  ;;  %v1422_v25 = vmul.f32 %v2076_v3, %v1107_v38  ;;  %v2078_v41 = vpop.eup %2077 }
 0x1f4   :  { %v1646_v45 = vmul.f32 %v2078_v41, %v1139_v39 }
 0x1f5   :  { %v1424_v53 = vsel %vm1423_vm10, %v1107_v38, %v1422_v25 }
 0x1f6   :  { %v1427_v29 = vsel %vm1425_vm11, %v1426_v27, %v1424_v53  ;;  %v1648_v24 = vsel %vm1647_vm13, %v1139_v39, %v1646_v45 }
 0x1f7   :  { %v1683_v4 = vsel %vm1171_vm12, %v1427_v29, 0.0  ;;  %v1651_v33 = vsel %vm1649_vm14, %v1650_v42, %v1648_v24 }
 0x1f8   :  { %1747 = vst [vmem:[#allocation5 + $0xf8] sm:$0xff] %v1683_v4  ;;  %v1715_v51 = vsel %vm1203_vm15, %v1651_v33, 0.0 }
 0x1f9   :  { %1779 = vst [vmem:[#allocation5 + $0x1f8] sm:$0xff] %v1715_v51 }
 0x1fa   :  { %2112 = shalt.err (!%p2109_p12)
}
 0x1fb   :  { %s2113_s25 = scalar_lea.hbm %s3617_s4, 8192 }
 0x1fc   :  { %p2114_p13 = scmp.ne.s32.totalorder %s3617_s4, %s2113_s25  ;;  %p2117_p0 = scmp.lt.u32.totalorder %s2113_s25, %s3617_s4 }
 0x1fe   :  { %p2119_p1 = pnand %p2117_p0, %p2114_p13 }
 0x200   :  { %2122 = shalt.err (!%p2119_p1)
}
 0x201   :  { %s2132_s29 = smov 256   ;;  %s2133_s30 = smov 16  }
 0x202   :  { %1791 = dma.vmem_to_hbm [thread:$0]  %s1786_s3, 8192, %s3617_s4, [#allocation4], %s2132_s29, %s2132_s29, %s2133_s30  }
 0x203   :  { %2125 = dma.done.wait [#allocation4], 8192  }
 0x204   :  { %2126 = vsyncadd [#allocation4], 4294959104 }
 0x205   :  { %1795 = vsyncpa [#allocation3], 1 }
 0x206   :  { %1796 = vsyncpa [#allocation4], 1 }

</bundles_post_ra>
